<compile_context>
chip_gen: v7x
topology: tpu7x:2x2x1
jax: 0.10.0
libtpu: 0.0.40
codegen_flags: <defaults>
</compile_context>

<pallas_src>
import functools

import jax
import jax.numpy as jnp
from jax import lax
from jax.experimental import pallas as pl
from jax.experimental.pallas import tpu as pltpu

_NEG_BIG = -1e30  # finite: avoids NaNs from (-inf) - (-inf)


def _mha_kernel(*refs, n_heads, head_size, masked, tq, tk, kv_share,
                n_kv_tiles):
    """One grid step == (batch b, query tile qi).

    Ref shapes:
      xq_ref  : (1, tq, C)    (absent when kv_share: queries sliced from xkv_ref)
      xkv_ref : (1, Tkv, C)   (block index depends only on b -> resident over qi)
      wq/wk/wv_ref : (C, C)   heads packed along lanes: [:, h*H:(h+1)*H]
                              (1/sqrt(C) already folded into wq)
      wpt_ref : (C, C)        output projection weight, pre-transposed
      bp_ref  : (1, C)
      out_ref : (1, tq, C)
      k_ref   : (1, Tkv, C)   lane-dense K cache (resident over qi)
      v_ref   : (1, Tkv, C)   lane-dense V cache (resident over qi)
      att_ref : (tq, C) f32   VMEM scratch holding concatenated head outputs
    """
    if kv_share:
        (xkv_ref, wq_ref, wk_ref, wv_ref, wpt_ref, bp_ref,
         out_ref, k_ref, v_ref, att_ref) = refs
        xq_ref = xkv_ref
    else:
        (xq_ref, xkv_ref, wq_ref, wk_ref, wv_ref, wpt_ref, bp_ref,
         out_ref, k_ref, v_ref, att_ref) = refs

    qi = pl.program_id(1)
    H = head_size

    # --- K/V projection: once per batch element. The K/V output blocks keep
    # the same block index across qi, so they stay resident in VMEM and later
    # query tiles simply read them.
    @pl.when(qi == 0)
    def _project_kv():
        xkv = xkv_ref[0]                                            # (Tkv, C)
        k_ref[0] = jnp.dot(xkv, wk_ref[...],
                           preferred_element_type=jnp.float32).astype(k_ref.dtype)
        v_ref[0] = jnp.dot(xkv, wv_ref[...],
                           preferred_element_type=jnp.float32).astype(v_ref.dtype)

    # --- Q projection (scale pre-folded into the packed weights).
    if kv_share:
        xq = xq_ref[0, pl.ds(pl.multiple_of(qi * tq, tq), tq), :]
    else:
        xq = xq_ref[0]
    q_all = jnp.dot(xq, wq_ref[...],
                    preferred_element_type=jnp.float32)             # (tq, C)
    q_all = q_all.astype(k_ref.dtype)       # cast once; per-head slices reuse

    # Loop-invariant mask helpers, hoisted out of the traced KV-step bodies.
    if masked:
        n_diag = tq // tk                # static number of diagonal-band tiles
        n_full = qi * n_diag             # traced number of fully-unmasked tiles
        row_ids = qi * tq + lax.broadcasted_iota(jnp.int32, (tq, tk), 0)
        col_base = lax.broadcasted_iota(jnp.int32, (tq, tk), 1)

    # --- attention + lane-offset write of each head's output into att_ref.
    for h in range(n_heads):
        lo = h * H
        qh = q_all[:, lo:lo + H]                                    # (tq, H)

        def kv_step(j, carry, col0=None, _qh=qh, _lo=lo):
            m_prev, l_prev, acc_prev = carry
            start = pl.multiple_of(j * tk, tk)
            kh = k_ref[0, pl.ds(start, tk), _lo:_lo + H]            # (tk, H)
            vh = v_ref[0, pl.ds(start, tk), _lo:_lo + H]            # (tk, H)
            # contract last dims directly (no materialized k.T transpose)
            s = lax.dot_general(_qh, kh, (((1,), (1,)), ((), ())),
                                preferred_element_type=jnp.float32)
            if col0 is not None:                     # diagonal-band tile only
                s = jnp.where(row_ids >= col0 + col_base, s, _NEG_BIG)
            m_new = jnp.maximum(m_prev, s.max(axis=-1, keepdims=True))
            p = jnp.exp(s - m_new)
            alpha = jnp.exp(m_prev - m_new)
            l_new = alpha * l_prev + p.sum(axis=-1, keepdims=True)
            acc_new = alpha * acc_prev + lax.dot_general(
                p.astype(vh.dtype), vh, (((1,), (0,)), ((), ())),
                preferred_element_type=jnp.float32)
            return m_new, l_new, acc_new

        carry = (jnp.full((tq, 1), _NEG_BIG, jnp.float32),
                 jnp.zeros((tq, 1), jnp.float32),
                 jnp.zeros((tq, H), jnp.float32))
        if masked:
            # interior tiles strictly below the diagonal band: no mask work
            carry = lax.fori_loop(0, n_full, kv_step, carry)
            # diagonal band: static tile count -> statically unrolled, masked
            for d in range(n_diag):
                carry = kv_step(n_full + d, carry, col0=qi * tq + d * tk)
        else:
            carry = lax.fori_loop(0, n_kv_tiles, kv_step, carry,
                                  unroll=2 if n_kv_tiles >= 2 else 1)
        _, l_f, acc_f = carry

        inv_l = pl.reciprocal(l_f, approx=True)       # EUP slot
        inv_l = inv_l * (2.0 - l_f * inv_l)           # one Newton step (~f32)
        att_ref[:, lo:lo + H] = acc_f * inv_l

    # --- dense output projection: contraction over full C, single MXU matmul.
    proj = jnp.dot(att_ref[...].astype(wpt_ref.dtype), wpt_ref[...],
                   preferred_element_type=jnp.float32)
    out_ref[0] = (proj + bp_ref[...]).astype(out_ref.dtype)


def _buffered_block_spec(shape, index_map, buffer_count=None):
    """BlockSpec; requests N-deep buffering when this jax build supports it."""
    if buffer_count is not None and hasattr(pl, "Buffered"):
        try:
            return pl.BlockSpec(shape, index_map,
                                pipeline_mode=pl.Buffered(buffer_count))
        except (TypeError, ValueError):
            pass
    return pl.BlockSpec(shape, index_map)


def _vmem_limit_bytes(frac=0.75, default=96 * 1024 * 1024):
    """~75% of physical per-core VMEM (leaves compiler scratch headroom)."""
    try:
        return int(pltpu.get_tpu_info().vmem_capacity_bytes * frac)
    except Exception:
        return default


def _pick_tiles(t_q, t_kv, q_tile, kv_tile, masked):
    tq = q_tile if (0 < q_tile < t_q and t_q % q_tile == 0
                    and q_tile % 8 == 0) else t_q
    if masked:
        # tk must divide tq so the diagonal band is a static number of tiles
        tk = kv_tile if (0 < kv_tile < tq and tq % kv_tile == 0
                         and kv_tile % 8 == 0) else tq
    else:
        tk = kv_tile if (0 < kv_tile < t_kv and t_kv % kv_tile == 0
                         and kv_tile % 8 == 0) else t_kv
    return tq, tk


def pack_mha_params(wq, wk, wv, w_proj, b_proj):
    """One-time lane-dense repack of per-head weights (call at init time)."""
    n_heads, d_model, head_size = wq.shape
    C = d_model
    assert n_heads * head_size == C, "concat(head outputs) must be d_model wide"
    scale = float(C) ** -0.5   # module scales by C**-0.5 (d_model), per spec
    return dict(
        wq_all=jnp.transpose(wq, (1, 0, 2)).reshape(C, C) * scale,
        wk_all=jnp.transpose(wk, (1, 0, 2)).reshape(C, C),
        wv_all=jnp.transpose(wv, (1, 0, 2)).reshape(C, C),
        wpt=w_proj.T,                       # kernel computes concat @ Wp^T
        bp=b_proj.reshape(1, C),
        n_heads=n_heads, head_size=head_size)


def multi_head_attention(x_q, x_kv, params, *, masked=True,
                         q_tile=256, kv_tile=128):
    """Pallas MHA. Returns (out, hidden) matching the PyTorch module.

    params: output of pack_mha_params (packed once at init).
    q_tile/kv_tile: query/KV tile lengths (256/128 suit v6e/v7x; 128/128 v5e).
    """
    if x_kv is None:
        x_kv = x_q
    kv_share = x_kv is x_q

    B, Tq, C = x_q.shape
    Bk, Tkv, Ck = x_kv.shape
    n_heads, H = params["n_heads"], params["head_size"]
    assert n_heads * H == C and (Bk, Ck) == (B, C)
    if masked:
        assert Tq == Tkv, "causal masking assumes aligned query/key positions"

    tq, tk = _pick_tiles(Tq, Tkv, q_tile, kv_tile, masked)
    nq = Tq // tq

    kernel = functools.partial(
        _mha_kernel, n_heads=n_heads, head_size=H, masked=masked,
        tq=tq, tk=tk, kv_share=kv_share, n_kv_tiles=Tkv // tk)

    out_shapes = (
        jax.ShapeDtypeStruct((B, Tq, C), x_q.dtype),
        jax.ShapeDtypeStruct((B, Tkv, C), x_q.dtype),   # lane-dense K cache
        jax.ShapeDtypeStruct((B, Tkv, C), x_q.dtype),   # lane-dense V cache
    )

    # Blocks whose index never changes across qi stay resident in VMEM; a
    # single buffer avoids paying 2x VMEM for them.
    w_spec = _buffered_block_spec((C, C), lambda b, q: (0, 0), 1)
    in_specs, args = [], []
    if not kv_share:
        in_specs.append(pl.BlockSpec((1, tq, C), lambda b, q: (b, q, 0)))
        args.append(x_q)
    in_specs.append(_buffered_block_spec((1, Tkv, C), lambda b, q: (b, 0, 0), 1))
    args.append(x_kv)
    in_specs += [w_spec, w_spec, w_spec, w_spec,
                 _buffered_block_spec((1, C), lambda b, q: (0, 0), 1)]
    args += [params["wq_all"], params["wk_all"], params["wv_all"],
             params["wpt"], params["bp"]]

    out_specs = [
        pl.BlockSpec((1, tq, C), lambda b, q: (b, q, 0)),
        _buffered_block_spec((1, Tkv, C), lambda b, q: (b, 0, 0), 1),
        _buffered_block_spec((1, Tkv, C), lambda b, q: (b, 0, 0), 1),
    ]

    out, k_all, v_all = pl.pallas_call(
        kernel,
        out_shape=out_shapes,
        grid=(B, nq),
        in_specs=in_specs,
        out_specs=out_specs,
        scratch_shapes=[pltpu.VMEM((tq, C), jnp.float32)],
        compiler_params=pltpu.CompilerParams(
            dimension_semantics=("parallel", "arbitrary"),
            vmem_limit_bytes=_vmem_limit_bytes()),
    )(*args)

    # Per-head K/V views for the returned hidden state (free wrapper slicing).
    hidden = [(k_all[..., h * H:(h + 1) * H], v_all[..., h * H:(h + 1) * H])
              for h in range(n_heads)]
    return out, hidden


def _reference(x_q, x_kv, wq, wk, wv, w_proj, b_proj, masked=True):
    """Pure-JAX reference mirroring the PyTorch module (eval mode)."""
    _, T, C = x_q.shape
    n_heads = wq.shape[0]
    outs, hidden = [], []
    for h in range(n_heads):
        q = x_q @ wq[h]
        k = x_kv @ wk[h]
        v = x_kv @ wv[h]
        wei = (q @ jnp.swapaxes(k, -2, -1)) * (C ** -0.5)
        if masked:
            mask = jnp.tril(jnp.ones((T, T)))
            wei = jnp.where(mask == 0, -jnp.inf, wei)
        wei = jax.nn.softmax(wei, axis=-1)
        outs.append(wei @ v)
        hidden.append((k, v))
    cat = jnp.concatenate(outs, axis=-1)
    return cat @ w_proj.T + b_proj, hidden


if __name__ == "__main__":
    d_model, n_heads, head_size = 32, 4, 8
    B = 2

    key = jax.random.PRNGKey(0)
    k1, k2, k3, k4, k5, k6, k7, k8 = jax.random.split(key, 8)

    wq = jax.random.normal(k2, (n_heads, d_model, head_size), jnp.float32) * 0.1
    wk = jax.random.normal(k3, (n_heads, d_model, head_size), jnp.float32) * 0.1
    wv = jax.random.normal(k4, (n_heads, d_model, head_size), jnp.float32) * 0.1
    w_proj = jax.random.normal(k5, (d_model, d_model), jnp.float32) * 0.1
    b_proj = jax.random.normal(k6, (d_model,), jnp.float32) * 0.1

    params = pack_mha_params(wq, wk, wv, w_proj, b_proj)   # one-time repack

    def check(out, hidden, ref_out, ref_hidden):
        assert out.shape == ref_out.shape
        assert jnp.allclose(out, ref_out, atol=1e-3, rtol=1e-3), \
            float(jnp.max(jnp.abs(out - ref_out)))
        for (kk, vv), (rk, rv) in zip(hidden, ref_hidden):
            assert jnp.allclose(kk, rk, atol=1e-4, rtol=1e-4)
            assert jnp.allclose(vv, rv, atol=1e-4, rtol=1e-4)

    # 1) masked self-attention, single tile (module's default usage)
    T = 8
    x1 = jax.random.normal(k1, (B, T, d_model), jnp.float32)
    out1, hid1 = multi_head_attention(x1, None, params, masked=True)
    out1 = jax.block_until_ready(out1)
    ref1, refh1 = _reference(x1, x1, wq, wk, wv, w_proj, b_proj, masked=True)
    assert len(hid1) == n_heads and hid1[0][0].shape == (B, T, head_size)
    check(out1, hid1, ref1, refh1)

    # 2) masked self-attention, 2 query tiles (exercises the interior-unmasked
    #    fori_loop + statically-unrolled diagonal-masked tile split)
    T2 = 16
    x2 = jax.random.normal(k7, (B, T2, d_model), jnp.float32)
    out2, hid2 = multi_head_attention(x2, None, params, masked=True,
                                      q_tile=8, kv_tile=8)
    out2 = jax.block_until_ready(out2)
    ref2, refh2 = _reference(x2, x2, wq, wk, wv, w_proj, b_proj, masked=True)
    check(out2, hid2, ref2, refh2)

    # 3) unmasked cross-attention (separate x_kv, multiple KV tiles, unroll=2)
    x_kv3 = jax.random.normal(k8, (B, T2, d_model), jnp.float32)
    out3, hid3 = multi_head_attention(x1, x_kv3, params, masked=False,
                                      q_tile=8, kv_tile=8)
    out3 = jax.block_until_ready(out3)
    ref3, refh3 = _reference(x1, x_kv3, wq, wk, wv, w_proj, b_proj, masked=False)
    check(out3, hid3, ref3, refh3)

    print("KERNEL_OK")
</pallas_src>

<mosaic_0001>
module attributes {stable_mosaic.version = 11 : i64} {
  func.func @_mha_kernel(%arg0: i32, %arg1: i32, %arg2: memref<1x8x32xf32, #tpu.memory_space<vmem>>, %arg3: memref<32x32xf32, #tpu.memory_space<vmem>>, %arg4: memref<32x32xf32, #tpu.memory_space<vmem>>, %arg5: memref<32x32xf32, #tpu.memory_space<vmem>>, %arg6: memref<32x32xf32, #tpu.memory_space<vmem>>, %arg7: memref<1x32xf32, #tpu.memory_space<vmem>>, %arg8: memref<1x8x32xf32, #tpu.memory_space<vmem>>, %arg9: memref<1x8x32xf32, #tpu.memory_space<vmem>>, %arg10: memref<1x8x32xf32, #tpu.memory_space<vmem>>, %arg11: memref<8x32xf32, #tpu.memory_space<vmem>>) attributes {dimension_semantics = [#tpu.dimension_semantics<parallel>, #tpu.dimension_semantics<arbitrary>], iteration_bounds = array<i64: 2, 1>, scalar_prefetch = 0 : i64, scratch_operands = 1 : i64, tpu.core_type = #tpu.core_type<tc>, window_params = [{pipeline_mode = #tpu.pipeline_mode<synchronous>, transform_indices = @transform_0, window_bounds = array<i64: 1, 8, 32>}, {pipeline_mode = #tpu.pipeline_mode<synchronous>, transform_indices = @transform_1, window_bounds = array<i64: 32, 32>}, {pipeline_mode = #tpu.pipeline_mode<synchronous>, transform_indices = @transform_2, window_bounds = array<i64: 32, 32>}, {pipeline_mode = #tpu.pipeline_mode<synchronous>, transform_indices = @transform_3, window_bounds = array<i64: 32, 32>}, {pipeline_mode = #tpu.pipeline_mode<synchronous>, transform_indices = @transform_4, window_bounds = array<i64: 32, 32>}, {pipeline_mode = #tpu.pipeline_mode<synchronous>, transform_indices = @transform_5, window_bounds = array<i64: 1, 32>}, {transform_indices = @transform_6, window_bounds = array<i64: 1, 8, 32>}, {pipeline_mode = #tpu.pipeline_mode<synchronous>, transform_indices = @transform_7, window_bounds = array<i64: 1, 8, 32>}, {pipeline_mode = #tpu.pipeline_mode<synchronous>, transform_indices = @transform_8, window_bounds = array<i64: 1, 8, 32>}]} {
    %c0_i32 = arith.constant 0 : i32
    %0 = arith.cmpi eq, %arg1, %c0_i32 : i32
    %1 = arith.extui %0 : i1 to i32
    %c0_i32_0 = arith.constant 0 : i32
    %2 = arith.cmpi ne, %1, %c0_i32_0 : i32
    scf.if %2 {
      %c0_96 = arith.constant 0 : index
      %c0_97 = arith.constant 0 : index
      %c0_98 = arith.constant 0 : index
      %217 = vector.load %arg2[%c0_96, %c0_97, %c0_98] : memref<1x8x32xf32, #tpu.memory_space<vmem>>, vector<1x8x32xf32>
      %218 = vector.shape_cast %217 : vector<1x8x32xf32> to vector<8x32xf32>
      %c0_99 = arith.constant 0 : index
      %c0_100 = arith.constant 0 : index
      %219 = vector.load %arg4[%c0_99, %c0_100] : memref<32x32xf32, #tpu.memory_space<vmem>>, vector<32x32xf32>
      %cst_101 = arith.constant dense<0.000000e+00> : vector<8x32xf32>
      %220 = tpu.matmul %218, %219, %cst_101 {dimension_numbers = #tpu.dot_dimension_numbers<[1], [0], [0], [1], [0, 0, 1, 1], [], []>} : vector<8x32xf32>, vector<32x32xf32>, vector<8x32xf32> -> vector<8x32xf32>
      %c0_102 = arith.constant 0 : index
      %c0_103 = arith.constant 0 : index
      %c0_104 = arith.constant 0 : index
      %221 = vector.load %arg9[%c0_102, %c0_103, %c0_104] : memref<1x8x32xf32, #tpu.memory_space<vmem>>, vector<1x8x32xf32>
      %222 = vector.shape_cast %221 : vector<1x8x32xf32> to vector<8x32xf32>
      %223 = vector.shape_cast %220 : vector<8x32xf32> to vector<1x8x32xf32>
      tpu.vector_store %arg9[%c0_102, %c0_103, %c0_104], %223 {strides = array<i32>} : memref<1x8x32xf32, #tpu.memory_space<vmem>>, vector<1x8x32xf32>,
      %c0_105 = arith.constant 0 : index
      %c0_106 = arith.constant 0 : index
      %224 = vector.load %arg5[%c0_105, %c0_106] : memref<32x32xf32, #tpu.memory_space<vmem>>, vector<32x32xf32>
      %cst_107 = arith.constant dense<0.000000e+00> : vector<8x32xf32>
      %225 = tpu.matmul %218, %224, %cst_107 {dimension_numbers = #tpu.dot_dimension_numbers<[1], [0], [0], [1], [0, 0, 1, 1], [], []>} : vector<8x32xf32>, vector<32x32xf32>, vector<8x32xf32> -> vector<8x32xf32>
      %c0_108 = arith.constant 0 : index
      %c0_109 = arith.constant 0 : index
      %c0_110 = arith.constant 0 : index
      %226 = vector.load %arg10[%c0_108, %c0_109, %c0_110] : memref<1x8x32xf32, #tpu.memory_space<vmem>>, vector<1x8x32xf32>
      %227 = vector.shape_cast %226 : vector<1x8x32xf32> to vector<8x32xf32>
      %228 = vector.shape_cast %225 : vector<8x32xf32> to vector<1x8x32xf32>
      tpu.vector_store %arg10[%c0_108, %c0_109, %c0_110], %228 {strides = array<i32>} : memref<1x8x32xf32, #tpu.memory_space<vmem>>, vector<1x8x32xf32>,
    } else {
    }
    %c8_i32 = arith.constant 8 : i32
    %3 = arith.muli %arg1, %c8_i32 : i32
    %4 = tpu.assume_multiple %3, 8 : i32
    %c0 = arith.constant 0 : index
    %5 = arith.index_cast %4 : i32 to index
    %c0_1 = arith.constant 0 : index
    %6 = vector.load %arg2[%c0, %5, %c0_1] : memref<1x8x32xf32, #tpu.memory_space<vmem>>, vector<1x8x32xf32>
    %7 = vector.shape_cast %6 : vector<1x8x32xf32> to vector<8x32xf32>
    %c0_2 = arith.constant 0 : index
    %c0_3 = arith.constant 0 : index
    %8 = vector.load %arg3[%c0_2, %c0_3] : memref<32x32xf32, #tpu.memory_space<vmem>>, vector<32x32xf32>
    %cst = arith.constant dense<0.000000e+00> : vector<8x32xf32>
    %9 = tpu.matmul %7, %8, %cst {dimension_numbers = #tpu.dot_dimension_numbers<[1], [0], [0], [1], [0, 0, 1, 1], [], []>} : vector<8x32xf32>, vector<32x32xf32>, vector<8x32xf32> -> vector<8x32xf32>
    %c1_i32 = arith.constant 1 : i32
    %10 = arith.muli %arg1, %c1_i32 : i32
    %c8_i32_4 = arith.constant 8 : i32
    %11 = arith.muli %arg1, %c8_i32_4 : i32
    %12 = tpu.iota {dimensions = array<i32: 0>} : vector<8x8xi32>
    %13 = vector.broadcast %11 : i32 to vector<8x8xi32>
    %14 = arith.addi %13, %12 : vector<8x8xi32>
    %15 = tpu.iota {dimensions = array<i32: 1>} : vector<8x8xi32>
    %16 = vector.extract_strided_slice %9 {offsets = [0, 0], sizes = [8, 8], strides = [1, 1]} : vector<8x32xf32> to vector<8x8xf32>
    %cst_5 = arith.constant -1.000000e+30 : f32
    %17 = vector.broadcast %cst_5 : f32 to vector<8x1xf32>
    %cst_6 = arith.constant 0.000000e+00 : f32
    %18 = vector.broadcast %cst_6 : f32 to vector<8x1xf32>
    %cst_7 = arith.constant 0.000000e+00 : f32
    %19 = vector.broadcast %cst_7 : f32 to vector<8x8xf32>
    %c0_i32_8 = arith.constant 0 : i32
    %20 = arith.subi %10, %c0_i32_8 : i32
    %21 = arith.addi %c0_i32_8, %20 : i32
    %c1_i32_9 = arith.constant 1 : i32
    %22:3 = scf.for %arg12 = %c0_i32_8 to %21 step %c1_i32_9 iter_args(%arg13 = %17, %arg14 = %18, %arg15 = %19) -> (vector<8x1xf32>, vector<8x1xf32>, vector<8x8xf32>)  : i32 {
      %c8_i32_96 = arith.constant 8 : i32
      %217 = arith.muli %arg12, %c8_i32_96 : i32
      %218 = tpu.assume_multiple %217, 8 : i32
      %c0_97 = arith.constant 0 : index
      %219 = arith.index_cast %218 : i32 to index
      %c0_98 = arith.constant 0 : index
      %220 = vector.load %arg9[%c0_97, %219, %c0_98] : memref<1x8x32xf32, #tpu.memory_space<vmem>>, vector<1x8x8xf32>
      %221 = vector.shape_cast %220 : vector<1x8x8xf32> to vector<8x8xf32>
      %c0_99 = arith.constant 0 : index
      %222 = arith.index_cast %218 : i32 to index
      %c0_100 = arith.constant 0 : index
      %223 = vector.load %arg10[%c0_99, %222, %c0_100] : memref<1x8x32xf32, #tpu.memory_space<vmem>>, vector<1x8x8xf32>
      %224 = vector.shape_cast %223 : vector<1x8x8xf32> to vector<8x8xf32>
      %cst_101 = arith.constant dense<0.000000e+00> : vector<8x8xf32>
      %225 = tpu.matmul %16, %221, %cst_101 {dimension_numbers = #tpu.dot_dimension_numbers<[1], [1], [0], [0], [0, 0, 1, 0], [], []>} : vector<8x8xf32>, vector<8x8xf32>, vector<8x8xf32> -> vector<8x8xf32>
      %cst_102 = arith.constant dense<0xFF800000> : vector<8xf32>
      %226 = vector.multi_reduction <maximumf>, %225, %cst_102 [1] : vector<8x8xf32> to vector<8xf32>
      %227 = vector.shape_cast %226 : vector<8xf32> to vector<8x1xf32>
      %228 = arith.maximumf %arg13, %227 : vector<8x1xf32>
      %229 = vector.broadcast %228 : vector<8x1xf32> to vector<8x8xf32>
      %230 = arith.subf %225, %229 : vector<8x8xf32>
      %231 = math.exp %230 : vector<8x8xf32>
      %232 = arith.subf %arg13, %228 : vector<8x1xf32>
      %233 = math.exp %232 : vector<8x1xf32>
      %234 = arith.mulf %233, %arg14 : vector<8x1xf32>
      %cst_103 = arith.constant dense<0.000000e+00> : vector<8xf32>
      %235 = vector.multi_reduction <add>, %231, %cst_103 [1] : vector<8x8xf32> to vector<8xf32>
      %236 = vector.shape_cast %235 : vector<8xf32> to vector<8x1xf32>
      %237 = arith.addf %234, %236 : vector<8x1xf32>
      %238 = vector.broadcast %233 : vector<8x1xf32> to vector<8x8xf32>
      %239 = arith.mulf %238, %arg15 : vector<8x8xf32>
      %cst_104 = arith.constant dense<0.000000e+00> : vector<8x8xf32>
      %240 = tpu.matmul %231, %224, %cst_104 {dimension_numbers = #tpu.dot_dimension_numbers<[1], [0], [0], [1], [0, 0, 1, 1], [], []>} : vector<8x8xf32>, vector<8x8xf32>, vector<8x8xf32> -> vector<8x8xf32>
      %241 = arith.addf %239, %240 : vector<8x8xf32>
      scf.yield %228, %237, %241 : vector<8x1xf32>, vector<8x1xf32>, vector<8x8xf32>
    }
    %c0_i32_10 = arith.constant 0 : i32
    %23 = arith.addi %10, %c0_i32_10 : i32
    %c8_i32_11 = arith.constant 8 : i32
    %24 = arith.muli %arg1, %c8_i32_11 : i32
    %c0_i32_12 = arith.constant 0 : i32
    %25 = arith.addi %24, %c0_i32_12 : i32
    %c8_i32_13 = arith.constant 8 : i32
    %26 = arith.muli %23, %c8_i32_13 : i32
    %27 = tpu.assume_multiple %26, 8 : i32
    %c0_14 = arith.constant 0 : index
    %28 = arith.index_cast %27 : i32 to index
    %c0_15 = arith.constant 0 : index
    %29 = vector.load %arg9[%c0_14, %28, %c0_15] : memref<1x8x32xf32, #tpu.memory_space<vmem>>, vector<1x8x8xf32>
    %30 = vector.shape_cast %29 : vector<1x8x8xf32> to vector<8x8xf32>
    %c0_16 = arith.constant 0 : index
    %31 = arith.index_cast %27 : i32 to index
    %c0_17 = arith.constant 0 : index
    %32 = vector.load %arg10[%c0_16, %31, %c0_17] : memref<1x8x32xf32, #tpu.memory_space<vmem>>, vector<1x8x8xf32>
    %33 = vector.shape_cast %32 : vector<1x8x8xf32> to vector<8x8xf32>
    %cst_18 = arith.constant dense<0.000000e+00> : vector<8x8xf32>
    %34 = tpu.matmul %16, %30, %cst_18 {dimension_numbers = #tpu.dot_dimension_numbers<[1], [1], [0], [0], [0, 0, 1, 0], [], []>} : vector<8x8xf32>, vector<8x8xf32>, vector<8x8xf32> -> vector<8x8xf32>
    %35 = vector.broadcast %25 : i32 to vector<8x8xi32>
    %36 = arith.addi %35, %15 : vector<8x8xi32>
    %37 = arith.cmpi sge, %14, %36 : vector<8x8xi32>
    %cst_19 = arith.constant -1.000000e+30 : f32
    %38 = vector.broadcast %cst_19 : f32 to vector<8x8xf32>
    %39 = arith.select %37, %34, %38 : vector<8x8xi1>, vector<8x8xf32>
    %cst_20 = arith.constant dense<0xFF800000> : vector<8xf32>
    %40 = vector.multi_reduction <maximumf>, %39, %cst_20 [1] : vector<8x8xf32> to vector<8xf32>
    %41 = vector.shape_cast %40 : vector<8xf32> to vector<8x1xf32>
    %42 = arith.maximumf %22#0, %41 : vector<8x1xf32>
    %43 = vector.broadcast %42 : vector<8x1xf32> to vector<8x8xf32>
    %44 = arith.subf %39, %43 : vector<8x8xf32>
    %45 = math.exp %44 : vector<8x8xf32>
    %46 = arith.subf %22#0, %42 : vector<8x1xf32>
    %47 = math.exp %46 : vector<8x1xf32>
    %48 = arith.mulf %47, %22#1 : vector<8x1xf32>
    %cst_21 = arith.constant dense<0.000000e+00> : vector<8xf32>
    %49 = vector.multi_reduction <add>, %45, %cst_21 [1] : vector<8x8xf32> to vector<8xf32>
    %50 = vector.shape_cast %49 : vector<8xf32> to vector<8x1xf32>
    %51 = arith.addf %48, %50 : vector<8x1xf32>
    %52 = vector.broadcast %47 : vector<8x1xf32> to vector<8x8xf32>
    %53 = arith.mulf %52, %22#2 : vector<8x8xf32>
    %cst_22 = arith.constant dense<0.000000e+00> : vector<8x8xf32>
    %54 = tpu.matmul %45, %33, %cst_22 {dimension_numbers = #tpu.dot_dimension_numbers<[1], [0], [0], [1], [0, 0, 1, 1], [], []>} : vector<8x8xf32>, vector<8x8xf32>, vector<8x8xf32> -> vector<8x8xf32>
    %55 = arith.addf %53, %54 : vector<8x8xf32>
    %56 = tpu.reciprocal %51 {approx = true} : vector<8x1xf32> -> vector<8x1xf32>
    %57 = arith.mulf %51, %56 : vector<8x1xf32>
    %cst_23 = arith.constant 2.000000e+00 : f32
    %58 = vector.broadcast %cst_23 : f32 to vector<8x1xf32>
    %59 = arith.subf %58, %57 : vector<8x1xf32>
    %60 = arith.mulf %56, %59 : vector<8x1xf32>
    %61 = vector.broadcast %60 : vector<8x1xf32> to vector<8x8xf32>
    %62 = arith.mulf %55, %61 : vector<8x8xf32>
    %c0_24 = arith.constant 0 : index
    %c0_25 = arith.constant 0 : index
    %63 = vector.load %arg11[%c0_24, %c0_25] : memref<8x32xf32, #tpu.memory_space<vmem>>, vector<8x8xf32>
    tpu.vector_store %arg11[%c0_24, %c0_25], %62 {strides = array<i32>} : memref<8x32xf32, #tpu.memory_space<vmem>>, vector<8x8xf32>,
    %64 = vector.extract_strided_slice %9 {offsets = [0, 8], sizes = [8, 8], strides = [1, 1]} : vector<8x32xf32> to vector<8x8xf32>
    %cst_26 = arith.constant -1.000000e+30 : f32
    %65 = vector.broadcast %cst_26 : f32 to vector<8x1xf32>
    %cst_27 = arith.constant 0.000000e+00 : f32
    %66 = vector.broadcast %cst_27 : f32 to vector<8x1xf32>
    %cst_28 = arith.constant 0.000000e+00 : f32
    %67 = vector.broadcast %cst_28 : f32 to vector<8x8xf32>
    %c0_i32_29 = arith.constant 0 : i32
    %68 = arith.subi %10, %c0_i32_29 : i32
    %69 = arith.addi %c0_i32_29, %68 : i32
    %c1_i32_30 = arith.constant 1 : i32
    %70:3 = scf.for %arg12 = %c0_i32_29 to %69 step %c1_i32_30 iter_args(%arg13 = %65, %arg14 = %66, %arg15 = %67) -> (vector<8x1xf32>, vector<8x1xf32>, vector<8x8xf32>)  : i32 {
      %c8_i32_96 = arith.constant 8 : i32
      %217 = arith.muli %arg12, %c8_i32_96 : i32
      %218 = tpu.assume_multiple %217, 8 : i32
      %c0_97 = arith.constant 0 : index
      %219 = arith.index_cast %218 : i32 to index
      %c8_98 = arith.constant 8 : index
      %220 = vector.load %arg9[%c0_97, %219, %c8_98] : memref<1x8x32xf32, #tpu.memory_space<vmem>>, vector<1x8x8xf32>
      %221 = vector.shape_cast %220 : vector<1x8x8xf32> to vector<8x8xf32>
      %c0_99 = arith.constant 0 : index
      %222 = arith.index_cast %218 : i32 to index
      %c8_100 = arith.constant 8 : index
      %223 = vector.load %arg10[%c0_99, %222, %c8_100] : memref<1x8x32xf32, #tpu.memory_space<vmem>>, vector<1x8x8xf32>
      %224 = vector.shape_cast %223 : vector<1x8x8xf32> to vector<8x8xf32>
      %cst_101 = arith.constant dense<0.000000e+00> : vector<8x8xf32>
      %225 = tpu.matmul %64, %221, %cst_101 {dimension_numbers = #tpu.dot_dimension_numbers<[1], [1], [0], [0], [0, 0, 1, 0], [], []>} : vector<8x8xf32>, vector<8x8xf32>, vector<8x8xf32> -> vector<8x8xf32>
      %cst_102 = arith.constant dense<0xFF800000> : vector<8xf32>
      %226 = vector.multi_reduction <maximumf>, %225, %cst_102 [1] : vector<8x8xf32> to vector<8xf32>
      %227 = vector.shape_cast %226 : vector<8xf32> to vector<8x1xf32>
      %228 = arith.maximumf %arg13, %227 : vector<8x1xf32>
      %229 = vector.broadcast %228 : vector<8x1xf32> to vector<8x8xf32>
      %230 = arith.subf %225, %229 : vector<8x8xf32>
      %231 = math.exp %230 : vector<8x8xf32>
      %232 = arith.subf %arg13, %228 : vector<8x1xf32>
      %233 = math.exp %232 : vector<8x1xf32>
      %234 = arith.mulf %233, %arg14 : vector<8x1xf32>
      %cst_103 = arith.constant dense<0.000000e+00> : vector<8xf32>
      %235 = vector.multi_reduction <add>, %231, %cst_103 [1] : vector<8x8xf32> to vector<8xf32>
      %236 = vector.shape_cast %235 : vector<8xf32> to vector<8x1xf32>
      %237 = arith.addf %234, %236 : vector<8x1xf32>
      %238 = vector.broadcast %233 : vector<8x1xf32> to vector<8x8xf32>
      %239 = arith.mulf %238, %arg15 : vector<8x8xf32>
      %cst_104 = arith.constant dense<0.000000e+00> : vector<8x8xf32>
      %240 = tpu.matmul %231, %224, %cst_104 {dimension_numbers = #tpu.dot_dimension_numbers<[1], [0], [0], [1], [0, 0, 1, 1], [], []>} : vector<8x8xf32>, vector<8x8xf32>, vector<8x8xf32> -> vector<8x8xf32>
      %241 = arith.addf %239, %240 : vector<8x8xf32>
      scf.yield %228, %237, %241 : vector<8x1xf32>, vector<8x1xf32>, vector<8x8xf32>
    }
    %c0_i32_31 = arith.constant 0 : i32
    %71 = arith.addi %10, %c0_i32_31 : i32
    %c8_i32_32 = arith.constant 8 : i32
    %72 = arith.muli %arg1, %c8_i32_32 : i32
    %c0_i32_33 = arith.constant 0 : i32
    %73 = arith.addi %72, %c0_i32_33 : i32
    %c8_i32_34 = arith.constant 8 : i32
    %74 = arith.muli %71, %c8_i32_34 : i32
    %75 = tpu.assume_multiple %74, 8 : i32
    %c0_35 = arith.constant 0 : index
    %76 = arith.index_cast %75 : i32 to index
    %c8 = arith.constant 8 : index
    %77 = vector.load %arg9[%c0_35, %76, %c8] : memref<1x8x32xf32, #tpu.memory_space<vmem>>, vector<1x8x8xf32>
    %78 = vector.shape_cast %77 : vector<1x8x8xf32> to vector<8x8xf32>
    %c0_36 = arith.constant 0 : index
    %79 = arith.index_cast %75 : i32 to index
    %c8_37 = arith.constant 8 : index
    %80 = vector.load %arg10[%c0_36, %79, %c8_37] : memref<1x8x32xf32, #tpu.memory_space<vmem>>, vector<1x8x8xf32>
    %81 = vector.shape_cast %80 : vector<1x8x8xf32> to vector<8x8xf32>
    %cst_38 = arith.constant dense<0.000000e+00> : vector<8x8xf32>
    %82 = tpu.matmul %64, %78, %cst_38 {dimension_numbers = #tpu.dot_dimension_numbers<[1], [1], [0], [0], [0, 0, 1, 0], [], []>} : vector<8x8xf32>, vector<8x8xf32>, vector<8x8xf32> -> vector<8x8xf32>
    %83 = vector.broadcast %73 : i32 to vector<8x8xi32>
    %84 = arith.addi %83, %15 : vector<8x8xi32>
    %85 = arith.cmpi sge, %14, %84 : vector<8x8xi32>
    %cst_39 = arith.constant -1.000000e+30 : f32
    %86 = vector.broadcast %cst_39 : f32 to vector<8x8xf32>
    %87 = arith.select %85, %82, %86 : vector<8x8xi1>, vector<8x8xf32>
    %cst_40 = arith.constant dense<0xFF800000> : vector<8xf32>
    %88 = vector.multi_reduction <maximumf>, %87, %cst_40 [1] : vector<8x8xf32> to vector<8xf32>
    %89 = vector.shape_cast %88 : vector<8xf32> to vector<8x1xf32>
    %90 = arith.maximumf %70#0, %89 : vector<8x1xf32>
    %91 = vector.broadcast %90 : vector<8x1xf32> to vector<8x8xf32>
    %92 = arith.subf %87, %91 : vector<8x8xf32>
    %93 = math.exp %92 : vector<8x8xf32>
    %94 = arith.subf %70#0, %90 : vector<8x1xf32>
    %95 = math.exp %94 : vector<8x1xf32>
    %96 = arith.mulf %95, %70#1 : vector<8x1xf32>
    %cst_41 = arith.constant dense<0.000000e+00> : vector<8xf32>
    %97 = vector.multi_reduction <add>, %93, %cst_41 [1] : vector<8x8xf32> to vector<8xf32>
    %98 = vector.shape_cast %97 : vector<8xf32> to vector<8x1xf32>
    %99 = arith.addf %96, %98 : vector<8x1xf32>
    %100 = vector.broadcast %95 : vector<8x1xf32> to vector<8x8xf32>
    %101 = arith.mulf %100, %70#2 : vector<8x8xf32>
    %cst_42 = arith.constant dense<0.000000e+00> : vector<8x8xf32>
    %102 = tpu.matmul %93, %81, %cst_42 {dimension_numbers = #tpu.dot_dimension_numbers<[1], [0], [0], [1], [0, 0, 1, 1], [], []>} : vector<8x8xf32>, vector<8x8xf32>, vector<8x8xf32> -> vector<8x8xf32>
    %103 = arith.addf %101, %102 : vector<8x8xf32>
    %104 = tpu.reciprocal %99 {approx = true} : vector<8x1xf32> -> vector<8x1xf32>
    %105 = arith.mulf %99, %104 : vector<8x1xf32>
    %cst_43 = arith.constant 2.000000e+00 : f32
    %106 = vector.broadcast %cst_43 : f32 to vector<8x1xf32>
    %107 = arith.subf %106, %105 : vector<8x1xf32>
    %108 = arith.mulf %104, %107 : vector<8x1xf32>
    %109 = vector.broadcast %108 : vector<8x1xf32> to vector<8x8xf32>
    %110 = arith.mulf %103, %109 : vector<8x8xf32>
    %c0_44 = arith.constant 0 : index
    %c8_45 = arith.constant 8 : index
    %111 = vector.load %arg11[%c0_44, %c8_45] : memref<8x32xf32, #tpu.memory_space<vmem>>, vector<8x8xf32>
    tpu.vector_store %arg11[%c0_44, %c8_45], %110 {strides = array<i32>} : memref<8x32xf32, #tpu.memory_space<vmem>>, vector<8x8xf32>,
    %112 = vector.extract_strided_slice %9 {offsets = [0, 16], sizes = [8, 8], strides = [1, 1]} : vector<8x32xf32> to vector<8x8xf32>
    %cst_46 = arith.constant -1.000000e+30 : f32
    %113 = vector.broadcast %cst_46 : f32 to vector<8x1xf32>
    %cst_47 = arith.constant 0.000000e+00 : f32
    %114 = vector.broadcast %cst_47 : f32 to vector<8x1xf32>
    %cst_48 = arith.constant 0.000000e+00 : f32
    %115 = vector.broadcast %cst_48 : f32 to vector<8x8xf32>
    %c0_i32_49 = arith.constant 0 : i32
    %116 = arith.subi %10, %c0_i32_49 : i32
    %117 = arith.addi %c0_i32_49, %116 : i32
    %c1_i32_50 = arith.constant 1 : i32
    %118:3 = scf.for %arg12 = %c0_i32_49 to %117 step %c1_i32_50 iter_args(%arg13 = %113, %arg14 = %114, %arg15 = %115) -> (vector<8x1xf32>, vector<8x1xf32>, vector<8x8xf32>)  : i32 {
      %c8_i32_96 = arith.constant 8 : i32
      %217 = arith.muli %arg12, %c8_i32_96 : i32
      %218 = tpu.assume_multiple %217, 8 : i32
      %c0_97 = arith.constant 0 : index
      %219 = arith.index_cast %218 : i32 to index
      %c16_98 = arith.constant 16 : index
      %220 = vector.load %arg9[%c0_97, %219, %c16_98] : memref<1x8x32xf32, #tpu.memory_space<vmem>>, vector<1x8x8xf32>
      %221 = vector.shape_cast %220 : vector<1x8x8xf32> to vector<8x8xf32>
      %c0_99 = arith.constant 0 : index
      %222 = arith.index_cast %218 : i32 to index
      %c16_100 = arith.constant 16 : index
      %223 = vector.load %arg10[%c0_99, %222, %c16_100] : memref<1x8x32xf32, #tpu.memory_space<vmem>>, vector<1x8x8xf32>
      %224 = vector.shape_cast %223 : vector<1x8x8xf32> to vector<8x8xf32>
      %cst_101 = arith.constant dense<0.000000e+00> : vector<8x8xf32>
      %225 = tpu.matmul %112, %221, %cst_101 {dimension_numbers = #tpu.dot_dimension_numbers<[1], [1], [0], [0], [0, 0, 1, 0], [], []>} : vector<8x8xf32>, vector<8x8xf32>, vector<8x8xf32> -> vector<8x8xf32>
      %cst_102 = arith.constant dense<0xFF800000> : vector<8xf32>
      %226 = vector.multi_reduction <maximumf>, %225, %cst_102 [1] : vector<8x8xf32> to vector<8xf32>
      %227 = vector.shape_cast %226 : vector<8xf32> to vector<8x1xf32>
      %228 = arith.maximumf %arg13, %227 : vector<8x1xf32>
      %229 = vector.broadcast %228 : vector<8x1xf32> to vector<8x8xf32>
      %230 = arith.subf %225, %229 : vector<8x8xf32>
      %231 = math.exp %230 : vector<8x8xf32>
      %232 = arith.subf %arg13, %228 : vector<8x1xf32>
      %233 = math.exp %232 : vector<8x1xf32>
      %234 = arith.mulf %233, %arg14 : vector<8x1xf32>
      %cst_103 = arith.constant dense<0.000000e+00> : vector<8xf32>
      %235 = vector.multi_reduction <add>, %231, %cst_103 [1] : vector<8x8xf32> to vector<8xf32>
      %236 = vector.shape_cast %235 : vector<8xf32> to vector<8x1xf32>
      %237 = arith.addf %234, %236 : vector<8x1xf32>
      %238 = vector.broadcast %233 : vector<8x1xf32> to vector<8x8xf32>
      %239 = arith.mulf %238, %arg15 : vector<8x8xf32>
      %cst_104 = arith.constant dense<0.000000e+00> : vector<8x8xf32>
      %240 = tpu.matmul %231, %224, %cst_104 {dimension_numbers = #tpu.dot_dimension_numbers<[1], [0], [0], [1], [0, 0, 1, 1], [], []>} : vector<8x8xf32>, vector<8x8xf32>, vector<8x8xf32> -> vector<8x8xf32>
      %241 = arith.addf %239, %240 : vector<8x8xf32>
      scf.yield %228, %237, %241 : vector<8x1xf32>, vector<8x1xf32>, vector<8x8xf32>
    }
    %c0_i32_51 = arith.constant 0 : i32
    %119 = arith.addi %10, %c0_i32_51 : i32
    %c8_i32_52 = arith.constant 8 : i32
    %120 = arith.muli %arg1, %c8_i32_52 : i32
    %c0_i32_53 = arith.constant 0 : i32
    %121 = arith.addi %120, %c0_i32_53 : i32
    %c8_i32_54 = arith.constant 8 : i32
    %122 = arith.muli %119, %c8_i32_54 : i32
    %123 = tpu.assume_multiple %122, 8 : i32
    %c0_55 = arith.constant 0 : index
    %124 = arith.index_cast %123 : i32 to index
    %c16 = arith.constant 16 : index
    %125 = vector.load %arg9[%c0_55, %124, %c16] : memref<1x8x32xf32, #tpu.memory_space<vmem>>, vector<1x8x8xf32>
    %126 = vector.shape_cast %125 : vector<1x8x8xf32> to vector<8x8xf32>
    %c0_56 = arith.constant 0 : index
    %127 = arith.index_cast %123 : i32 to index
    %c16_57 = arith.constant 16 : index
    %128 = vector.load %arg10[%c0_56, %127, %c16_57] : memref<1x8x32xf32, #tpu.memory_space<vmem>>, vector<1x8x8xf32>
    %129 = vector.shape_cast %128 : vector<1x8x8xf32> to vector<8x8xf32>
    %cst_58 = arith.constant dense<0.000000e+00> : vector<8x8xf32>
    %130 = tpu.matmul %112, %126, %cst_58 {dimension_numbers = #tpu.dot_dimension_numbers<[1], [1], [0], [0], [0, 0, 1, 0], [], []>} : vector<8x8xf32>, vector<8x8xf32>, vector<8x8xf32> -> vector<8x8xf32>
    %131 = vector.broadcast %121 : i32 to vector<8x8xi32>
    %132 = arith.addi %131, %15 : vector<8x8xi32>
    %133 = arith.cmpi sge, %14, %132 : vector<8x8xi32>
    %cst_59 = arith.constant -1.000000e+30 : f32
    %134 = vector.broadcast %cst_59 : f32 to vector<8x8xf32>
    %135 = arith.select %133, %130, %134 : vector<8x8xi1>, vector<8x8xf32>
    %cst_60 = arith.constant dense<0xFF800000> : vector<8xf32>
    %136 = vector.multi_reduction <maximumf>, %135, %cst_60 [1] : vector<8x8xf32> to vector<8xf32>
    %137 = vector.shape_cast %136 : vector<8xf32> to vector<8x1xf32>
    %138 = arith.maximumf %118#0, %137 : vector<8x1xf32>
    %139 = vector.broadcast %138 : vector<8x1xf32> to vector<8x8xf32>
    %140 = arith.subf %135, %139 : vector<8x8xf32>
    %141 = math.exp %140 : vector<8x8xf32>
    %142 = arith.subf %118#0, %138 : vector<8x1xf32>
    %143 = math.exp %142 : vector<8x1xf32>
    %144 = arith.mulf %143, %118#1 : vector<8x1xf32>
    %cst_61 = arith.constant dense<0.000000e+00> : vector<8xf32>
    %145 = vector.multi_reduction <add>, %141, %cst_61 [1] : vector<8x8xf32> to vector<8xf32>
    %146 = vector.shape_cast %145 : vector<8xf32> to vector<8x1xf32>
    %147 = arith.addf %144, %146 : vector<8x1xf32>
    %148 = vector.broadcast %143 : vector<8x1xf32> to vector<8x8xf32>
    %149 = arith.mulf %148, %118#2 : vector<8x8xf32>
    %cst_62 = arith.constant dense<0.000000e+00> : vector<8x8xf32>
    %150 = tpu.matmul %141, %129, %cst_62 {dimension_numbers = #tpu.dot_dimension_numbers<[1], [0], [0], [1], [0, 0, 1, 1], [], []>} : vector<8x8xf32>, vector<8x8xf32>, vector<8x8xf32> -> vector<8x8xf32>
    %151 = arith.addf %149, %150 : vector<8x8xf32>
    %152 = tpu.reciprocal %147 {approx = true} : vector<8x1xf32> -> vector<8x1xf32>
    %153 = arith.mulf %147, %152 : vector<8x1xf32>
    %cst_63 = arith.constant 2.000000e+00 : f32
    %154 = vector.broadcast %cst_63 : f32 to vector<8x1xf32>
    %155 = arith.subf %154, %153 : vector<8x1xf32>
    %156 = arith.mulf %152, %155 : vector<8x1xf32>
    %157 = vector.broadcast %156 : vector<8x1xf32> to vector<8x8xf32>
    %158 = arith.mulf %151, %157 : vector<8x8xf32>
    %c0_64 = arith.constant 0 : index
    %c16_65 = arith.constant 16 : index
    %159 = vector.load %arg11[%c0_64, %c16_65] : memref<8x32xf32, #tpu.memory_space<vmem>>, vector<8x8xf32>
    tpu.vector_store %arg11[%c0_64, %c16_65], %158 {strides = array<i32>} : memref<8x32xf32, #tpu.memory_space<vmem>>, vector<8x8xf32>,
    %160 = vector.extract_strided_slice %9 {offsets = [0, 24], sizes = [8, 8], strides = [1, 1]} : vector<8x32xf32> to vector<8x8xf32>
    %cst_66 = arith.constant -1.000000e+30 : f32
    %161 = vector.broadcast %cst_66 : f32 to vector<8x1xf32>
    %cst_67 = arith.constant 0.000000e+00 : f32
    %162 = vector.broadcast %cst_67 : f32 to vector<8x1xf32>
    %cst_68 = arith.constant 0.000000e+00 : f32
    %163 = vector.broadcast %cst_68 : f32 to vector<8x8xf32>
    %c0_i32_69 = arith.constant 0 : i32
    %164 = arith.subi %10, %c0_i32_69 : i32
    %165 = arith.addi %c0_i32_69, %164 : i32
    %c1_i32_70 = arith.constant 1 : i32
    %166:3 = scf.for %arg12 = %c0_i32_69 to %165 step %c1_i32_70 iter_args(%arg13 = %161, %arg14 = %162, %arg15 = %163) -> (vector<8x1xf32>, vector<8x1xf32>, vector<8x8xf32>)  : i32 {
      %c8_i32_96 = arith.constant 8 : i32
      %217 = arith.muli %arg12, %c8_i32_96 : i32
      %218 = tpu.assume_multiple %217, 8 : i32
      %c0_97 = arith.constant 0 : index
      %219 = arith.index_cast %218 : i32 to index
      %c24_98 = arith.constant 24 : index
      %220 = vector.load %arg9[%c0_97, %219, %c24_98] : memref<1x8x32xf32, #tpu.memory_space<vmem>>, vector<1x8x8xf32>
      %221 = vector.shape_cast %220 : vector<1x8x8xf32> to vector<8x8xf32>
      %c0_99 = arith.constant 0 : index
      %222 = arith.index_cast %218 : i32 to index
      %c24_100 = arith.constant 24 : index
      %223 = vector.load %arg10[%c0_99, %222, %c24_100] : memref<1x8x32xf32, #tpu.memory_space<vmem>>, vector<1x8x8xf32>
      %224 = vector.shape_cast %223 : vector<1x8x8xf32> to vector<8x8xf32>
      %cst_101 = arith.constant dense<0.000000e+00> : vector<8x8xf32>
      %225 = tpu.matmul %160, %221, %cst_101 {dimension_numbers = #tpu.dot_dimension_numbers<[1], [1], [0], [0], [0, 0, 1, 0], [], []>} : vector<8x8xf32>, vector<8x8xf32>, vector<8x8xf32> -> vector<8x8xf32>
      %cst_102 = arith.constant dense<0xFF800000> : vector<8xf32>
      %226 = vector.multi_reduction <maximumf>, %225, %cst_102 [1] : vector<8x8xf32> to vector<8xf32>
      %227 = vector.shape_cast %226 : vector<8xf32> to vector<8x1xf32>
      %228 = arith.maximumf %arg13, %227 : vector<8x1xf32>
      %229 = vector.broadcast %228 : vector<8x1xf32> to vector<8x8xf32>
      %230 = arith.subf %225, %229 : vector<8x8xf32>
      %231 = math.exp %230 : vector<8x8xf32>
      %232 = arith.subf %arg13, %228 : vector<8x1xf32>
      %233 = math.exp %232 : vector<8x1xf32>
      %234 = arith.mulf %233, %arg14 : vector<8x1xf32>
      %cst_103 = arith.constant dense<0.000000e+00> : vector<8xf32>
      %235 = vector.multi_reduction <add>, %231, %cst_103 [1] : vector<8x8xf32> to vector<8xf32>
      %236 = vector.shape_cast %235 : vector<8xf32> to vector<8x1xf32>
      %237 = arith.addf %234, %236 : vector<8x1xf32>
      %238 = vector.broadcast %233 : vector<8x1xf32> to vector<8x8xf32>
      %239 = arith.mulf %238, %arg15 : vector<8x8xf32>
      %cst_104 = arith.constant dense<0.000000e+00> : vector<8x8xf32>
      %240 = tpu.matmul %231, %224, %cst_104 {dimension_numbers = #tpu.dot_dimension_numbers<[1], [0], [0], [1], [0, 0, 1, 1], [], []>} : vector<8x8xf32>, vector<8x8xf32>, vector<8x8xf32> -> vector<8x8xf32>
      %241 = arith.addf %239, %240 : vector<8x8xf32>
      scf.yield %228, %237, %241 : vector<8x1xf32>, vector<8x1xf32>, vector<8x8xf32>
    }
    %c0_i32_71 = arith.constant 0 : i32
    %167 = arith.addi %10, %c0_i32_71 : i32
    %c8_i32_72 = arith.constant 8 : i32
    %168 = arith.muli %arg1, %c8_i32_72 : i32
    %c0_i32_73 = arith.constant 0 : i32
    %169 = arith.addi %168, %c0_i32_73 : i32
    %c8_i32_74 = arith.constant 8 : i32
    %170 = arith.muli %167, %c8_i32_74 : i32
    %171 = tpu.assume_multiple %170, 8 : i32
    %c0_75 = arith.constant 0 : index
    %172 = arith.index_cast %171 : i32 to index
    %c24 = arith.constant 24 : index
    %173 = vector.load %arg9[%c0_75, %172, %c24] : memref<1x8x32xf32, #tpu.memory_space<vmem>>, vector<1x8x8xf32>
    %174 = vector.shape_cast %173 : vector<1x8x8xf32> to vector<8x8xf32>
    %c0_76 = arith.constant 0 : index
    %175 = arith.index_cast %171 : i32 to index
    %c24_77 = arith.constant 24 : index
    %176 = vector.load %arg10[%c0_76, %175, %c24_77] : memref<1x8x32xf32, #tpu.memory_space<vmem>>, vector<1x8x8xf32>
    %177 = vector.shape_cast %176 : vector<1x8x8xf32> to vector<8x8xf32>
    %cst_78 = arith.constant dense<0.000000e+00> : vector<8x8xf32>
    %178 = tpu.matmul %160, %174, %cst_78 {dimension_numbers = #tpu.dot_dimension_numbers<[1], [1], [0], [0], [0, 0, 1, 0], [], []>} : vector<8x8xf32>, vector<8x8xf32>, vector<8x8xf32> -> vector<8x8xf32>
    %179 = vector.broadcast %169 : i32 to vector<8x8xi32>
    %180 = arith.addi %179, %15 : vector<8x8xi32>
    %181 = arith.cmpi sge, %14, %180 : vector<8x8xi32>
    %cst_79 = arith.constant -1.000000e+30 : f32
    %182 = vector.broadcast %cst_79 : f32 to vector<8x8xf32>
    %183 = arith.select %181, %178, %182 : vector<8x8xi1>, vector<8x8xf32>
    %cst_80 = arith.constant dense<0xFF800000> : vector<8xf32>
    %184 = vector.multi_reduction <maximumf>, %183, %cst_80 [1] : vector<8x8xf32> to vector<8xf32>
    %185 = vector.shape_cast %184 : vector<8xf32> to vector<8x1xf32>
    %186 = arith.maximumf %166#0, %185 : vector<8x1xf32>
    %187 = vector.broadcast %186 : vector<8x1xf32> to vector<8x8xf32>
    %188 = arith.subf %183, %187 : vector<8x8xf32>
    %189 = math.exp %188 : vector<8x8xf32>
    %190 = arith.subf %166#0, %186 : vector<8x1xf32>
    %191 = math.exp %190 : vector<8x1xf32>
    %192 = arith.mulf %191, %166#1 : vector<8x1xf32>
    %cst_81 = arith.constant dense<0.000000e+00> : vector<8xf32>
    %193 = vector.multi_reduction <add>, %189, %cst_81 [1] : vector<8x8xf32> to vector<8xf32>
    %194 = vector.shape_cast %193 : vector<8xf32> to vector<8x1xf32>
    %195 = arith.addf %192, %194 : vector<8x1xf32>
    %196 = vector.broadcast %191 : vector<8x1xf32> to vector<8x8xf32>
    %197 = arith.mulf %196, %166#2 : vector<8x8xf32>
    %cst_82 = arith.constant dense<0.000000e+00> : vector<8x8xf32>
    %198 = tpu.matmul %189, %177, %cst_82 {dimension_numbers = #tpu.dot_dimension_numbers<[1], [0], [0], [1], [0, 0, 1, 1], [], []>} : vector<8x8xf32>, vector<8x8xf32>, vector<8x8xf32> -> vector<8x8xf32>
    %199 = arith.addf %197, %198 : vector<8x8xf32>
    %200 = tpu.reciprocal %195 {approx = true} : vector<8x1xf32> -> vector<8x1xf32>
    %201 = arith.mulf %195, %200 : vector<8x1xf32>
    %cst_83 = arith.constant 2.000000e+00 : f32
    %202 = vector.broadcast %cst_83 : f32 to vector<8x1xf32>
    %203 = arith.subf %202, %201 : vector<8x1xf32>
    %204 = arith.mulf %200, %203 : vector<8x1xf32>
    %205 = vector.broadcast %204 : vector<8x1xf32> to vector<8x8xf32>
    %206 = arith.mulf %199, %205 : vector<8x8xf32>
    %c0_84 = arith.constant 0 : index
    %c24_85 = arith.constant 24 : index
    %207 = vector.load %arg11[%c0_84, %c24_85] : memref<8x32xf32, #tpu.memory_space<vmem>>, vector<8x8xf32>
    tpu.vector_store %arg11[%c0_84, %c24_85], %206 {strides = array<i32>} : memref<8x32xf32, #tpu.memory_space<vmem>>, vector<8x8xf32>,
    %c0_86 = arith.constant 0 : index
    %c0_87 = arith.constant 0 : index
    %208 = vector.load %arg11[%c0_86, %c0_87] : memref<8x32xf32, #tpu.memory_space<vmem>>, vector<8x32xf32>
    %c0_88 = arith.constant 0 : index
    %c0_89 = arith.constant 0 : index
    %209 = vector.load %arg6[%c0_88, %c0_89] : memref<32x32xf32, #tpu.memory_space<vmem>>, vector<32x32xf32>
    %cst_90 = arith.constant dense<0.000000e+00> : vector<8x32xf32>
    %210 = tpu.matmul %208, %209, %cst_90 {dimension_numbers = #tpu.dot_dimension_numbers<[1], [0], [0], [1], [0, 0, 1, 1], [], []>} : vector<8x32xf32>, vector<32x32xf32>, vector<8x32xf32> -> vector<8x32xf32>
    %c0_91 = arith.constant 0 : index
    %c0_92 = arith.constant 0 : index
    %211 = vector.load %arg7[%c0_91, %c0_92] : memref<1x32xf32, #tpu.memory_space<vmem>>, vector<1x32xf32>
    %212 = vector.broadcast %211 : vector<1x32xf32> to vector<8x32xf32>
    %213 = arith.addf %210, %212 : vector<8x32xf32>
    %c0_93 = arith.constant 0 : index
    %c0_94 = arith.constant 0 : index
    %c0_95 = arith.constant 0 : index
    %214 = vector.load %arg8[%c0_93, %c0_94, %c0_95] : memref<1x8x32xf32, #tpu.memory_space<vmem>>, vector<1x8x32xf32>
    %215 = vector.shape_cast %214 : vector<1x8x32xf32> to vector<8x32xf32>
    %216 = vector.shape_cast %213 : vector<8x32xf32> to vector<1x8x32xf32>
    tpu.vector_store %arg8[%c0_93, %c0_94, %c0_95], %216 {strides = array<i32>} : memref<1x8x32xf32, #tpu.memory_space<vmem>>, vector<1x8x32xf32>,
    return
  }
  func.func @transform_0(%arg0: i32, %arg1: i32) -> (i32, i32, i32) {
    %c0_i32 = arith.constant 0 : i32
    %c0_i32_0 = arith.constant 0 : i32
    %c0_i32_1 = arith.constant 0 : i32
    return %arg0, %c0_i32, %c0_i32_0 : i32, i32, i32
  }
  func.func @transform_1(%arg0: i32, %arg1: i32) -> (i32, i32) {
    %c0_i32 = arith.constant 0 : i32
    %c0_i32_0 = arith.constant 0 : i32
    %c0_i32_1 = arith.constant 0 : i32
    return %c0_i32, %c0_i32_0 : i32, i32
  }
  func.func @transform_2(%arg0: i32, %arg1: i32) -> (i32, i32) {
    %c0_i32 = arith.constant 0 : i32
    %c0_i32_0 = arith.constant 0 : i32
    %c0_i32_1 = arith.constant 0 : i32
    return %c0_i32, %c0_i32_0 : i32, i32
  }
  func.func @transform_3(%arg0: i32, %arg1: i32) -> (i32, i32) {
    %c0_i32 = arith.constant 0 : i32
    %c0_i32_0 = arith.constant 0 : i32
    %c0_i32_1 = arith.constant 0 : i32
    return %c0_i32, %c0_i32_0 : i32, i32
  }
  func.func @transform_4(%arg0: i32, %arg1: i32) -> (i32, i32) {
    %c0_i32 = arith.constant 0 : i32
    %c0_i32_0 = arith.constant 0 : i32
    %c0_i32_1 = arith.constant 0 : i32
    return %c0_i32, %c0_i32_0 : i32, i32
  }
  func.func @transform_5(%arg0: i32, %arg1: i32) -> (i32, i32) {
    %c0_i32 = arith.constant 0 : i32
    %c0_i32_0 = arith.constant 0 : i32
    %c0_i32_1 = arith.constant 0 : i32
    return %c0_i32, %c0_i32_0 : i32, i32
  }
  func.func @transform_6(%arg0: i32, %arg1: i32) -> (i32, i32, i32) {
    %c0_i32 = arith.constant 0 : i32
    %c0_i32_0 = arith.constant 0 : i32
    return %arg0, %arg1, %c0_i32 : i32, i32, i32
  }
  func.func @transform_7(%arg0: i32, %arg1: i32) -> (i32, i32, i32) {
    %c0_i32 = arith.constant 0 : i32
    %c0_i32_0 = arith.constant 0 : i32
    %c0_i32_1 = arith.constant 0 : i32
    return %arg0, %c0_i32, %c0_i32_0 : i32, i32, i32
  }
  func.func @transform_8(%arg0: i32, %arg1: i32) -> (i32, i32, i32) {
    %c0_i32 = arith.constant 0 : i32
    %c0_i32_0 = arith.constant 0 : i32
    %c0_i32_1 = arith.constant 0 : i32
    return %arg0, %c0_i32, %c0_i32_0 : i32, i32, i32
  }
}

</mosaic_0001>

<bundles_post_ra>
// kernel: tpu_custom_call.1
= control target key start
LH: loop header
LB: loop body
LE: loop exit
PB: predicated region body
PF: predicated region fallthrough
CT: control target
= control target key end

     0   :  { %s3649_s0 = inlined_call_operand.hbm [shape: f32[2,8,32], index: 0, kind: input, shape index: {}]   ;;  %s3650_s1 = inlined_call_operand.hbm [shape: f32[32,32], index: 1, kind: input, shape index: {}]   ;;  %s3651_s2 = inlined_call_operand.hbm [shape: f32[32,32], index: 2, kind: input, shape index: {}]   ;;  %s3652_s3 = inlined_call_operand.hbm [shape: f32[32,32], index: 3, kind: input, shape index: {}]   ;;  %s3653_s4 = inlined_call_operand.hbm [shape: f32[32,32], index: 4, kind: input, shape index: {}]   ;;  %s3654_s5 = inlined_call_operand.hbm [shape: f32[1,32], index: 5, kind: input, shape index: {}]   ;;  %s3655_s6 = inlined_call_operand.hbm [shape: f32[2,8,32], index: 6, kind: output, shape index: {0}]   ;;  %s3656_s7 = inlined_call_operand.hbm [shape: f32[2,8,32], index: 7, kind: output, shape index: {1}]   ;;  %s3657_s8 = inlined_call_operand.hbm [shape: f32[2,8,32], index: 8, kind: output, shape index: {2}]  }
   0x1   :  { %3677 = sst [smem:[#allocation26_spill]] %s3649_s0 }
   0x2   :  { %3678 = sst [smem:[#allocation27_spill]] %s3650_s1 }
   0x3   :  { %3679 = sst [smem:[#allocation28_spill]] %s3651_s2 }
   0x4   :  { %3680 = sst [smem:[#allocation29_spill]] %s3652_s3 }
   0x5   :  { %3681 = sst [smem:[#allocation30_spill]] %s3655_s6 }
   0x6   :  { %14 = vsyncpa [#allocation4], 0 }
   0x7   :  { %15 = vsyncpa [#allocation7], 0 }
   0x8   :  { %16 = vsyncpa [#allocation10], 0 }
   0x9   :  { %17 = vsyncpa [#allocation13], 0 }
   0xa   :  { %18 = vsyncpa [#allocation5], 0 }
   0xb   :  { %20 = vsyncpa [#allocation5 + $0x1], 0 }
   0xc   :  { %21 = vsyncpa [#allocation16], 0  ;;  %s3215_s27 = smov 0   ;;  %s3217_s28 = smov 0  }
   0xd   :  { %s3219_s29 = smov 0   ;;  %s3221_s30 = smov 0  }
   0xe   :  { %s3223_s9 = smov 0   ;;  %s3225_s10 = smov 0  }
   0xf LB: > { %3682 = sst [smem:[#allocation24_spill]] %s3144_s9  ;;  %s3150_s11 = smov [#allocation6]   ;;  %s3148_s10 = sphi %s3225_s10, %s27_s10   ;;  %s3144_s9 = sphi %s3223_s9, %s3709_s9   ;;  %s3140_s30 = sphi %s3221_s30, %s3708_s30   ;;  %s3136_s29 = sphi %s3219_s29, %s3712_s29   ;;  %s3132_s28 = sphi %s3217_s28, %s3711_s28   ;;  %s3128_s27 = sphi %s3215_s27, %s3710_s27  }
  0x10   : > { %s280_s12 = sshll.u32 %s3150_s11, 4  ;;  %s3659_s13 = sadd.s32 4294967295, %s3148_s10   ;;  %s3254_s12 = int_to_ptr.vmem [resolvable:$true] %s280_s12 }
  0x11   : > { %p2474_p0 = scmp.ge.s32.totalorder %s3148_s10, 1  ;;  %p3249_p1 = scmp.eq.s32.totalorder %s3659_s13, 0 }
  0x12   : > { %p255_p2 = scmp.lt.s32.totalorder %s3148_s10, 3  ;;  %s3151_s16 = smov [#allocation9]  }
  0x13   : > { %s3683_s14 = scalar_select %p3249_p1, 1, 0 }
  0x14   : > { %p3256_p3 = pnand %p2474_p0, %p255_p2  ;;  %s306_s17 = sshll.u32 %s3151_s16, 4  ;;  %s3262_s17 = int_to_ptr.vmem [resolvable:$true] %s306_s17 }
  0x15   : > { %s3686_s1 = sld [smem:[#allocation27_spill]] }
  0x16   : > { %s3684_s15 = scalar_select %p3256_p3, 1, 0 }
  0x17   : > { %p3658_p4 = pneg %p3256_p3 }
  0x19   : > { %p3269_p5 = pnand %p3658_p4, %p3249_p1 }
  0x1b   : > { %s3685_s18 = scalar_select %p3269_p5, 1, 0 }
  0x1c   : > { %s2824_s21 = scalar_lea.hbm %s3686_s1, 512  ;;  %p3281_p7 = pneg %p3269_p5 }
  0x1d   : > { %p2825_p6 = scmp.ne.s32.totalorder %s3686_s1, %s2824_s21  ;;  %p2831_p10 = scmp.lt.u32.totalorder %s2824_s21, %s3686_s1 }
  0x1e   : > { %s3687_s24 = scalar_select %p3281_p7, 1, 0 }
  0x1f   : > { %p2827_p8 = pnand %p3281_p7, %p2825_p6 }
  0x21   : > { %p2828_p9 = pneg %p2827_p8 }
  0x23   : > { %p2833_p11 = pnand %p2831_p10, %p2828_p9 }
  0x25   : > { %2836 = shalt.err (!%p2833_p11)
}
  0x26   : > { %s2837_s11 = scalar_lea.vmem %s3254_s12, 512  ;;  %p2845_p2 = scmp.lt.s32.totalorder %s3254_s12, %s3254_s12 }
  0x27   : > { %p2838_p12 = scmp.ne.s32.totalorder %s3254_s12, %s2837_s11  ;;  %p2846_p4 = scmp.lt.s32.totalorder %s2837_s11, %s2837_s11 }
  0x29   : > { %p2840_p13 = pnand %p2838_p12, %p3281_p7  ;;  %p2847_p6 = por %p2846_p4, %p2845_p2 }
  0x2b   : > { %p2841_p0 = pneg %p2840_p13 }
  0x2d   : > { %p2848_p8 = pnand %p2847_p6, %p2841_p0 }
  0x2f   : > { %2851 = shalt.err (!%p2848_p8)
}
  0x30   : > { %s3661_s16 = smov 128   ;;  %s3663_s19 = smov 8  }
  0x31   : > { %2705 = dma.hbm_to_vmem [thread:$0]  (!%p3269_p5), %s3686_s1, 512, %s3254_s12, [#allocation7], %s3661_s16, %s3661_s16, %s3663_s19  }
  0x32   : > { %s3688_s3 = sld [smem:[#allocation29_spill]] }
  0x38   : > { %s2852_s25 = scalar_lea.hbm %s3688_s3, 512 }
  0x39   : > { %p2853_p4 = scmp.ne.s32.totalorder %s3688_s3, %s2852_s25  ;;  %p2859_p11 = scmp.lt.u32.totalorder %s2852_s25, %s3688_s3 }
  0x3b   : > { %p2855_p9 = pnand %p2853_p4, %p3281_p7 }
  0x3d   : > { %p2856_p10 = pneg %p2855_p9 }
  0x3f   : > { %p2861_p12 = pnand %p2859_p11, %p2856_p10 }
  0x41   : > { %2864 = shalt.err (!%p2861_p12)
}
  0x42   : > { %s2865_s12 = scalar_lea.vmem %s3262_s17, 512  ;;  %p2873_p6 = scmp.lt.s32.totalorder %s3262_s17, %s3262_s17 }
  0x43   : > { %p2866_p13 = scmp.ne.s32.totalorder %s3262_s17, %s2865_s12  ;;  %p2874_p8 = scmp.lt.s32.totalorder %s2865_s12, %s2865_s12 }
  0x45   : > { %p2868_p0 = pnand %p2866_p13, %p3281_p7  ;;  %p2875_p4 = por %p2874_p8, %p2873_p6 }
  0x47   : > { %p2869_p2 = pneg %p2868_p0 }
  0x49   : > { %p2876_p9 = pnand %p2875_p4, %p2869_p2 }
  0x4b   : > { %2879 = shalt.err (!%p2876_p9)
}
  0x4c   : > { %2711 = dma.hbm_to_vmem [thread:$0]  (!%p3269_p5), %s3688_s3, 512, %s3262_s17, [#allocation10], %s3661_s16, %s3661_s16, %s3663_s19  }
  0x4d   : > { %s2473_s20 = sadd.s32 4294967294, %s3148_s10   ;;  %s39_s21 = sadd.s32 1, %s3144_s9 }
  0x4e   : > { %s46_s22 = sadd.s32 1, %s3136_s29  ;;  %p41_p10 = scmp.ge.s32.totalorder %s39_s21, 2 }
  0x4f   : > { %p59_p11 = scmp.ne.s32.totalorder %s3132_s28, %s3128_s27  ;;  %p189_p12 = scmp.ne.s32.totalorder %s3136_s29, %s3132_s28 }
  0x50   : > { %s3689_s23 = sadd.s32 4294967295, %s3148_s10   ;;  %s3714_s21 = smov (%p41_p10, %s39_s21), 0 }
  0x51   : > { %p190_p13 = scmp.eq.s32.totalorder %s3689_s23, 1  ;;  %3690 = sst [smem:[#allocation25_spill]] %s3714_s21 }
  0x52   : > { %p3344_p0 = por %p3249_p1, %p59_p11  ;;  %s43_s26 = ssub.s32 %s3144_s9, %s3714_s21 }
  0x53   : > { %p3348_p2 = por %p190_p13, %p189_p12  ;;  %p196_p6 = scmp.eq.s32.totalorder %s2473_s20, 1 }
  0x54   : > { %s3691_s25 = scalar_select %p3344_p0, 1, 0 }
  0x55   : > { %s3692_s17 = scalar_select %p3348_p2, 1, 0 }
  0x56   : > { %p44_p8 = scmp.eq.s32.totalorder %s43_s26, 0  ;;  %s3355_s11 = sshll.u32 %s3140_s30, 7 }
  0x57   : > { %p3357_p4 = por %p196_p6, %p59_p11  ;;  %s3694_s0 = sld [smem:[#allocation26_spill]] }
  0x58   : > { %s3366_s16 = scalar_select %p44_p8, %s3136_s29, %s46_s22  }
  0x59   : > { %s3693_s12 = scalar_select %p3357_p4, 1, 0 }
  0x5a   : > { %p3695_p9 = pneg %p3256_p3  ;;  %s3154_s30 = smov [#allocation3]  }
  0x5b   : > { %s270_s20 = sshll.u32 %s3154_s30, 4  ;;  %s271_s20 = int_to_ptr.vmem [resolvable:$true] %s270_s20 }
  0x5c   : > { %p3373_p10 = pnand %p3695_p9, %p3344_p0 }
  0x5d   : > { %s268_s23 = scalar_lea.hbm %s3694_s0, %s3355_s11  ;;  %s2885_s13 = scalar_lea.hbm %s3694_s0, 256 }
  0x5e   : > { %s2880_s26 = scalar_lea.hbm %s268_s23, 128  ;;  %p2882_p12 = pneg %p3373_p10 }
  0x5f   : > { %p2881_p11 = scmp.ne.s32.totalorder %s268_s23, %s2880_s26  ;;  %p2886_p8 = scmp.lt.u32.totalorder %s268_s23, %s3694_s0 }
  0x60   : > { %p2887_p9 = scmp.lt.u32.totalorder %s2885_s13, %s2880_s26  ;;  %p2889_p2 = scmp.lt.u32.totalorder %s2880_s26, %s268_s23 }
  0x61   : > { %p2883_p13 = pnand %p2882_p12, %p2881_p11 }
  0x62   : > { %p2888_p4 = por %p2887_p9, %p2886_p8 }
  0x63   : > { %p2884_p6 = pneg %p2883_p13 }
  0x64   : > { %p2890_p1 = por %p2889_p2, %p2888_p4 }
  0x66   : > { %p2891_p0 = pnand %p2890_p1, %p2884_p6 }
  0x68   : > { %2894 = shalt.err (!%p2891_p0)
}
  0x69   : > { %s2895_s30 = scalar_lea.vmem %s271_s20, 128  ;;  %p2903_p5 = scmp.lt.s32.totalorder %s271_s20, %s271_s20 }
  0x6a   : > { %p2896_p3 = scmp.ne.s32.totalorder %s271_s20, %s2895_s30  ;;  %p2904_p7 = scmp.lt.s32.totalorder %s2895_s30, %s2895_s30 }
  0x6c   : > { %p2898_p11 = pnand %p2896_p3, %p2882_p12  ;;  %p2905_p8 = por %p2904_p7, %p2903_p5 }
  0x6e   : > { %p2899_p13 = pneg %p2898_p11 }
  0x70   : > { %p2906_p9 = pnand %p2905_p8, %p2899_p13 }
  0x72   : > { %2909 = shalt.err (!%p2906_p9)
}
  0x73   : > { %2702 = dma.hbm_to_vmem [thread:$0]  (!%p3373_p10), %s268_s23, 128, %s271_s20, [#allocation4]  }
  0x74   : > { %s3155_s1 = smov [#allocation8]   ;;  %s3156_s26 = smov [#allocation11]  }
  0x75   : > { %s293_s3 = sshll.u32 %s3155_s1, 4  ;;  %s319_s22 = sshll.u32 %s3156_s26, 4  ;;  %s294_s3 = int_to_ptr.vmem [resolvable:$true] %s293_s3  ;;  %s320_s22 = int_to_ptr.vmem [resolvable:$true] %s319_s22 }
  0x76   : > { %s3697_s2 = sld [smem:[#allocation28_spill]]  ;;  %p3698_p3 = scmp.ne.s32.totalorder %s3687_s24, 0 }
  0x7c   : > { %s2910_s0 = scalar_lea.hbm %s3697_s2, 512 }
  0x7d   : > { %p2911_p1 = scmp.ne.s32.totalorder %s3697_s2, %s2910_s0  ;;  %p2917_p0 = scmp.lt.u32.totalorder %s2910_s0, %s3697_s2 }
  0x7f   : > { %p2913_p5 = pnand %p2911_p1, %p3698_p3 }
  0x81   : > { %p2914_p7 = pneg %p2913_p5 }
  0x83   : > { %p2919_p2 = pnand %p2917_p0, %p2914_p7 }
  0x85   : > { %2922 = shalt.err (!%p2919_p2)
}
  0x86   : > { %s2923_s23 = scalar_lea.vmem %s294_s3, 512  ;;  %p2931_p6 = scmp.lt.s32.totalorder %s294_s3, %s294_s3 }
  0x87   : > { %p2924_p4 = scmp.ne.s32.totalorder %s294_s3, %s2923_s23  ;;  %p2932_p11 = scmp.lt.s32.totalorder %s2923_s23, %s2923_s23 }
  0x89   : > { %p2926_p10 = pnand %p2924_p4, %p3698_p3  ;;  %p2933_p13 = por %p2932_p11, %p2931_p6 }
  0x8b   : > { %p2927_p12 = pneg %p2926_p10 }
  0x8d   : > { %p2934_p8 = pnand %p2933_p13, %p2927_p12 }
  0x8f   : > { %2937 = shalt.err (!%p2934_p8)
}
  0x90   : > { %p3699_p9 = scmp.ne.s32.totalorder %s3685_s18, 0  ;;  %s3700_s9 = smov 8  }
  0x91   : > { %s3701_s21 = smov 128   ;;  %s2938_s6 = scalar_lea.hbm %s3653_s4, 512 }
  0x92   : > { %2708 = dma.hbm_to_vmem [thread:$0]  (!%p3699_p9), %s3697_s2, 512, %s294_s3, [#allocation7], %s3701_s21, %s3701_s21, %s3700_s9  }
  0x93   : > { %p2939_p1 = scmp.ne.s32.totalorder %s3653_s4, %s2938_s6  ;;  %p2945_p0 = scmp.lt.u32.totalorder %s2938_s6, %s3653_s4 }
  0x95   : > { %p2941_p5 = pnand %p2939_p1, %p3698_p3 }
  0x97   : > { %p2942_p7 = pneg %p2941_p5 }
  0x99   : > { %p2947_p2 = pnand %p2945_p0, %p2942_p7 }
  0x9b   : > { %2950 = shalt.err (!%p2947_p2)
}
  0x9c   : > { %s2951_s20 = scalar_lea.vmem %s320_s22, 512  ;;  %p2959_p6 = scmp.lt.s32.totalorder %s320_s22, %s320_s22 }
  0x9d   : > { %p2952_p4 = scmp.ne.s32.totalorder %s320_s22, %s2951_s20  ;;  %p2960_p11 = scmp.lt.s32.totalorder %s2951_s20, %s2951_s20 }
  0x9f   : > { %p2954_p10 = pnand %p2952_p4, %p3698_p3  ;;  %p2961_p13 = por %p2960_p11, %p2959_p6 }
  0xa1   : > { %p2955_p12 = pneg %p2954_p10 }
  0xa3   : > { %p2962_p8 = pnand %p2961_p13, %p2955_p12 }
  0xa5   : > { %2965 = shalt.err (!%p2962_p8)
}
  0xa6   : > { %2714 = dma.hbm_to_vmem [thread:$0]  (!%p3699_p9), %s3653_s4, 512, %s320_s22, [#allocation10], %s3701_s21, %s3701_s21, %s3700_s9  }
  0xa7   : > { %s3157_s1 = smov [#allocation12]   ;;  %s2966_s30 = scalar_lea.hbm %s3654_s5, 16 }
  0xa8   : > { %s333_s26 = sshll.u32 %s3157_s1, 4  ;;  %p2967_p1 = scmp.ne.s32.totalorder %s3654_s5, %s2966_s30  ;;  %s334_s26 = int_to_ptr.vmem [resolvable:$true] %s333_s26 }
  0xa9   : > { %p2973_p0 = scmp.lt.u32.totalorder %s2966_s30, %s3654_s5 }
  0xaa   : > { %p2969_p5 = pnand %p2967_p1, %p3698_p3 }
  0xac   : > { %p2970_p7 = pneg %p2969_p5 }
  0xae   : > { %p2975_p2 = pnand %p2973_p0, %p2970_p7 }
  0xb0   : > { %2978 = shalt.err (!%p2975_p2)
}
  0xb1   : > { %s2979_s22 = scalar_lea.vmem %s334_s26, 16  ;;  %s2986_s9 = scalar_lea.vmem %s334_s26, 32 }
  0xb2   : > { %p2980_p4 = scmp.ne.s32.totalorder %s334_s26, %s2979_s22  ;;  %p2987_p6 = scmp.lt.s32.totalorder %s334_s26, %s334_s26 }
  0xb3   : > { %p2988_p11 = scmp.lt.s32.totalorder %s2986_s9, %s2979_s22 }
  0xb4   : > { %p2982_p10 = pnand %p2980_p4, %p3698_p3 }
  0xb5   : > { %p2989_p13 = por %p2988_p11, %p2987_p6 }
  0xb6   : > { %p2983_p12 = pneg %p2982_p10 }
  0xb8   : > { %p2990_p8 = pnand %p2989_p13, %p2983_p12 }
  0xba   : > { %2993 = shalt.err (!%p2990_p8)
}
  0xbb   : > { %2717 = dma.hbm_to_vmem [thread:$0]  (!%p3699_p9), %s3654_s5, 16, %s334_s26, [#allocation13]  }
  0xbc   : > { %p3702_p1 = scmp.ne.s32.totalorder %s3684_s15, 0 }
  0xbd   : > { %p3703_p5 = scmp.ne.s32.totalorder (!%p3702_p1), %s3691_s25, 0 }
  0xbe   : > { %346 = sbr.rel (%p3702_p1) target bundleno = 1766 (0x6e6), region = 44 }
  0xc5   : > { %3103 = dma.done.wait (%p3703_p5), [#allocation4], 128  }
  0xc6   : > { %3105 = vsyncadd (%p3703_p5), [#allocation4], 4294967168  ;;  %p3704_p3 = scmp.ne.s32.totalorder %s3683_s14, 0 }
  0xc8   : > { %3107 = dma.done.wait (%p3704_p3), [#allocation7], 1024  }
  0xc9   : > { %3109 = vsyncadd (%p3704_p3), [#allocation7], 4294966272 }
  0xca   : > { %3111 = dma.done.wait (%p3704_p3), [#allocation10], 1024  }
  0xcb   : > { %3113 = vsyncadd (%p3704_p3), [#allocation10], 4294966272 }
  0xcc   : > { %3115 = dma.done.wait (%p3704_p3), [#allocation13], 16  }
  0xcd   : > { %3117 = vsyncadd (%p3704_p3), [#allocation13], 4294967280  ;;  %v3158_v0 = vmov 0.0|0.0   ;;  %vm3159_vm0 = vmmov 0   ;;  %v3160_v1 = vmov 0.0   ;;  %v400_v2 = vld [vmem:[#allocation8] sm:$0xff]  ;;  %v635_v34 = vlaneseq  ;;  %s2236_s26 = scalar_lea.hbm %s3656_s7, %s3355_s11 }
  0xce   : > { %2647 = vmatprep.subr.bf16.mxu0 %v3158_v0  ;;  %2571 = vmatprep.mubr.msk.f32.mxu0 %vm3159_vm0, %v3160_v1  ;;  %v401_v3 = vld [vmem:[#allocation8 + $0x8] sm:$0xff]  ;;  %v402_v4 = vld [vmem:[#allocation8 + $0x10] sm:$0xff]  ;;  %v403_v6 = vld [vmem:[#allocation8 + $0x18] sm:$0xff]  ;;  %vm404_vm1 = vcmask 261120   ;;  %vm826_vm2 = vcmask 64512   ;;  %s3161_s2 = smov 120  }
  0xcf   : > { %2653 = vmatprep.subr.bf16.mxu1 %v3158_v0  ;;  %2582 = vmatprep.mubr.msk.f32.mxu1 %vm3159_vm0, %v3160_v1  ;;  %v2648_v5 = vpack.c.bf16 %v401_v3, %v400_v2  ;;  %v2651_v7 = vpack.c.bf16 %v403_v6, %v402_v4  ;;  %v479_v8 = vld [vmem:[#allocation9] sm:$0xff]  ;;  %v480_v9 = vld [vmem:[#allocation9 + $0x8] sm:$0xff]  ;;  %v399_v13 = vld [vmem:[#allocation3] sm:$0xff]  ;;  %s3162_s14 = smov 112   ;;  %s3163_s15 = smov 104   ;;  %v636_v35 = vshrl.u32 %v635_v34, 7 }
  0xd0   : > { %v557_v10 = vld [vmem:[#allocation6] sm:$0xff]  ;;  %v558_v11 = vld [vmem:[#allocation6 + $0x8] sm:$0xff]  ;;  %v2654_v12 = vpack.c.bf16 %v480_v9, %v479_v8  ;;  %v559_v15 = vld [vmem:[#allocation6 + $0x10] sm:$0xff]  ;;  %v640_v36 = vand.u32 127, %v635_v34  ;;  %s3164_s18 = smov 8   ;;  %s3165_s24 = smov 16  }
  0xd1   : > { %2649 = vmatpush3.bf16.msra.mxu0 %v2648_v5  ;;  %v2660_v14 = vpack.c.bf16 %v558_v11, %v557_v10  ;;  %v560_v16 = vld [vmem:[#allocation6 + $0x18] sm:$0xff]  ;;  %v481_v18 = vld [vmem:[#allocation9 + $0x10] sm:$0xff]  ;;  %s3166_s25 = smov 24   ;;  %vm1374_vm4 = vcmask 130112   ;;  %vm1748_vm5 = vcmask 195712   ;;  %vm2122_vm6 = vcmask 261312  }
  0xd2   : > { %2650 = vmatprep.subr.bf16.mxu0 %v3158_v0  ;;  %2655 = vmatpush3.bf16.msra.mxu1 %v2654_v12  ;;  %v2663_v17 = vpack.c.bf16 %v560_v16, %v559_v15  ;;  %v482_v19 = vld [vmem:[#allocation9 + $0x18] sm:$0xff]  ;;  %vm904_vm3 = vcmp.ge.s32.totalorder %v636_v35, %v640_v36  ;;  %s3167_s6 = smov [#allocation15]   ;;  %p3705_p7 = scmp.ne.s32.totalorder %s3692_s17, 0 }
  0xd3   : > { %2656 = vmatprep.subr.bf16.mxu1 %v3158_v0  ;;  %v2657_v20 = vpack.c.bf16 %v482_v19, %v481_v18  ;;  %s2238_s13 = sshll.u32 %s3167_s6, 4  ;;  %s2239_s13 = int_to_ptr.vmem [resolvable:$true] %s2238_s13 }
  0xd4   : > { %s2994_s30 = scalar_lea.vmem %s2239_s13, 128  ;;  %p3001_p4 = scmp.lt.s32.totalorder %s2239_s13, %s2239_s13 }
  0xd5   : > { %2652 = vmatpush3.bf16.msra.mxu0 %v2651_v7  ;;  %p2995_p9 = scmp.ne.s32.totalorder %s2239_s13, %s2994_s30  ;;  %p3002_p10 = scmp.lt.s32.totalorder %s2994_s30, %s2994_s30 }
  0xd6   : > { %2659 = vmatprep.subr.bf16.mxu0 %v3158_v0  ;;  %2658 = vmatpush3.bf16.msra.mxu1 %v2657_v20 }
  0xd7   : > { %2596 = vmatprep.subr.mxu1 %v3160_v1  ;;  %p2996_p0 = pnand %p2995_p9, %p3705_p7  ;;  %p3003_p12 = por %p3002_p10, %p3001_p4 }
  0xd8   : > { %2572 = vmatmul.mubr.msk.f32.vlgmr.msra.gmra.mrb[0].mxu0 %vm404_vm1, %v399_v13 }
  0xd9   : > { %2661 = vmatpush3.bf16.msra.mxu0 %v2660_v14  ;;  %2593 = vmatprep.mubr.msk.f32.mxu0 %vm3159_vm0, %v3160_v1  ;;  %p2997_p2 = pneg %p2996_p0 }
  0xda   : > { %2662 = vmatprep.subr.bf16.mxu0 %v3158_v0  ;;  %2583 = vmatmul.mubr.msk.f32.vlgmr.msra.gmra.mrb[0].mxu1 %vm404_vm1, %v399_v13 }
  0xdb   : > { %2598 = vmatprep.mubr.msk.f32.mxu1 %vm3159_vm0, %v3160_v1  ;;  %p3004_p6 = pnand %p3003_p12, %p2997_p2 }
  0xdd   : > { %2664 = vmatpush3.bf16.msra.mxu0 %v2663_v17 }
  0xde   : > { %2616 = vmatprep.subr.mxu0 %v3160_v1 }
  0xe0   : > { %2594 = vmatmul.mubr.msk.f32.vlgmr.msra.gmra.mrb[2].mxu0 %vm404_vm1, %v399_v13 }
  0xe1   : > { %2618 = vmatprep.mubr.msk.f32.mxu0 %vm3159_vm0, %v3160_v1 }
 0x1ab   : > { %v474_v21 = vpop.f32.mrb[0].mxu0 }
 0x1ac   : > { %478 = vst.msk [vmem:[#allocation15] sm:$0xff] %vm404_vm1, %v474_v21  ;;  %v2573_v22 = vpop.f32.mrb[1].mxu0 }
 0x1ad   : > { %v549_v26 = vpop.f32.mrb[0].mxu1 }
 0x1ae   : > { %553 = vst.msk [vmem:[#allocation17] sm:$0xff] %vm404_vm1, %v549_v26  ;;  %v2584_v27 = vpop.f32.mrb[1].mxu1 }
 0x1b3   : > { %v631_v23 = vpop.f32.mrb[2].mxu0  ;;  %v823_v24 = vld [vmem:[#allocation15] sm:$0xff] }
 0x1b4   : > { %2597 = vmatpush3.xpose.msk.msra.mxu1 %vm826_vm2, %v823_v24  ;;  %1191 = vrot.lane.b32.xlu1 %v631_v23, %s3161_s2  ;;  %v2595_v25 = vpop.f32.mrb[3].mxu0 }
 0x1b5   : > { %2601 = vmatprep.subr.mxu1 %v3160_v1  ;;  %v3504_v28 = vld [vmem:[#allocation17] sm:$0xff] }
 0x1b7   : > { %2599 = vmatmul.mubr.msk.f32.vlgmr.msra.gmra.mrb[2].mxu1 %vm826_vm2, %v631_v23 }
 0x1b8   : > { %1568 = vrot.lane.b32.xlu1 %v823_v24, %s3162_s14  ;;  %2603 = vmatprep.mubr.msk.f32.mxu1 %vm3159_vm0, %v3160_v1 }
 0x1b9   : > { %2602 = vmatpush3.msra.mxu1 %v3504_v28 }
 0x1ba   : > { %2606 = vmatprep.subr.mxu1 %v3160_v1 }
 0x1bc   : > { %1565 = vrot.lane.b32.xlu1 %v631_v23, %s3162_s14 }
 0x1c0   : > { %1942 = vrot.lane.b32.xlu1 %v823_v24, %s3163_s15 }
 0x1c4   : > { %1939 = vrot.lane.b32.xlu1 %v631_v23, %s3163_s15 }
 0x226   : > { %v1192_v29 = vpop.permute.xlu1 %1191 }
 0x22a   : > { %v1569_v30 = vpop.permute.xlu1 %1568 }
 0x22b   : > { %2617 = vmatpush3.xpose.msk.msra.mxu0 %vm826_vm2, %v1569_v30 }
 0x22c   : > { %2626 = vmatprep.subr.mxu0 %v3160_v1 }
 0x22e   : > { %v1566_v31 = vpop.permute.xlu1 %1565 }
 0x22f   : > { %2619 = vmatmul.mubr.msk.f32.vlgmr.msra.gmra.mrb[4].mxu0 %vm826_vm2, %v1566_v31 }
 0x230   : > { %2628 = vmatprep.mubr.msk.f32.mxu0 %vm3159_vm0, %v3160_v1 }
 0x232   : > { %v1943_v32 = vpop.permute.xlu1 %1942 }
 0x233   : > { %2627 = vmatpush3.xpose.msk.msra.mxu0 %vm826_vm2, %v1943_v32 }
 0x234   : > { %2665 = vmatprep.subr.bf16.mxu0 %v3158_v0 }
 0x236   : > { %v1940_v33 = vpop.permute.xlu1 %1939 }
 0x237   : > { %2629 = vmatmul.mubr.msk.f32.vlgmr.msra.gmra.mrb[6].mxu0 %vm826_vm2, %v1940_v33 }
 0x238   : > { %2644 = vmatprep.mubr.msk.f32.mxu0 %vm3159_vm0, %v3160_v1 }
 0x28a   : > { %v899_v37 = vpop.f32.mrb[2].mxu1 }
 0x28b   : > { %v905_v38 = vsel %vm904_vm3, %v899_v37, -1e+30  ;;  %v2600_v39 = vpop.f32.mrb[3].mxu1 }
 0x28c   : > { %v906_v40 = vsel %vm826_vm2, %v905_v38, -inf }
 0x28d   : > { %907 = vmax.xlane.f32.xlu0 %v906_v40 }
 0x2a3   : > { %1194 = vrot.lane.b32.xlu0 %v823_v24, %s3161_s2 }
 0x302   : > { %v1640_v41 = vpop.f32.mrb[4].mxu0 }
 0x303   : > { %v1644_v42 = vsel %vm904_vm3, %v1640_v41, -1e+30  ;;  %v2620_v43 = vpop.f32.mrb[5].mxu0 }
 0x304   : > { %v1645_v44 = vsel %vm826_vm2, %v1644_v42, -inf }
 0x305   : > { %1646 = vmax.xlane.f32.xlu0 %v1645_v44 }
 0x30a   : > { %v2014_v45 = vpop.f32.mrb[6].mxu0 }
 0x30b   : > { %v2018_v46 = vsel %vm904_vm3, %v2014_v45, -1e+30  ;;  %v2630_v47 = vpop.f32.mrb[7].mxu0 }
 0x30c   : > { %v2019_v48 = vsel %vm826_vm2, %v2018_v46, -inf }
 0x30d   : > { %2020 = vmax.xlane.f32.xlu1 %v2019_v48 }
 0x31a   : > { %v908_v49 = vpop.xlane.xlu0 %907 }
 0x31b   : > { %v909_v50 = vmax.f32 %v908_v49, -1e+30  ;;  %1288 = vrot.lane.b32.xlu0 %v3504_v28, %s3161_s2 }
 0x31d   : > { %v910_v51 = vsub.f32 %v905_v38, %v909_v50  ;;  %v913_v57 = vsub.f32 -1e+30, %v909_v50 }
 0x31e   : > { %v1195_v54 = vpop.permute.xlu0 %1194 }
 0x31f   : > { %v911_v52 = vmul.f32 1.442695, %v910_v51  ;;  %v914_v58 = vmul.f32 1.442695, %v913_v57  ;;  %v2126_v57 = vld [vmem:[#allocation11 + $0x8] sm:$0xff] }
 0x321   : > { %2800 = vpow2.f32 %v911_v52 }
 0x322   : > { %2802 = vpow2.f32 %v914_v58 }
 0x32b   : > { %v2801_v53 = vpop.eup %2800 }
 0x32c   : > { %2604 = vmatmul.mubr.msk.f32.vlgmr.msra.gmra.mrb[4].mxu1 %vm826_vm2, %v2801_v53  ;;  %v2803_v59 = vpop.eup %2802  ;;  %v917_v25 = vsel %vm826_vm2, %v2801_v53, 0.0 }
 0x32d   : > { %2607 = vmatpush3.xpose.msk.msra.mxu1 %vm826_vm2, %v1195_v54  ;;  %2608 = vmatprep.mubr.msk.f32.mxu1 %vm3159_vm0, %v3160_v1  ;;  %v916_v60 = vmul.f32 0.0, %v2803_v59 }
 0x32e   : > { %2611 = vmatprep.subr.mxu1 %v3160_v1 }
 0x330   : > { %2609 = vmatmul.mubr.msk.f32.vlgmr.msra.gmra.mrb[6].mxu1 %vm826_vm2, %v1192_v29 }
 0x331   : > { %2613 = vmatprep.mubr.msk.f32.mxu1 %vm3159_vm0, %v3160_v1 }
 0x392   : > { %v3535_v55 = vpop.xlane.xlu0 %1646 }
 0x393   : > { %v1648_v6 = vmax.f32 %v3535_v55, -1e+30 }
 0x395   : > { %v1649_v7 = vsub.f32 %v1644_v42, %v1648_v6  ;;  %v1652_v34 = vsub.f32 -1e+30, %v1648_v6 }
 0x396   : > { %v1289_v56 = vpop.permute.xlu0 %1288 }
 0x397   : > { %2612 = vmatpush3.msra.mxu1 %v1289_v56  ;;  %v1650_v8 = vmul.f32 1.442695, %v1649_v7  ;;  %v1653_v38 = vmul.f32 1.442695, %v1652_v34  ;;  %v2125_v56 = vld [vmem:[#allocation11] sm:$0xff] }
 0x398   : > { %2621 = vmatprep.subr.mxu1 %v3160_v1  ;;  %v2666_v59 = vpack.c.bf16 %v2126_v57, %v2125_v56 }
 0x399   : > { %2804 = vpow2.f32 %v1650_v8 }
 0x39a   : > { %v2021_v11 = vpop.xlane.xlu1 %2020  ;;  %2667 = vmatpush3.bf16.msra.mxu0 %v2666_v59 }
 0x39b   : > { %v2022_v12 = vmax.f32 %v2021_v11, -1e+30  ;;  %2668 = vmatprep.subr.bf16.mxu0 %v3158_v0 }
 0x39d   : > { %v2023_v14 = vsub.f32 %v2018_v46, %v2022_v12 }
 0x39f   : > { %v2024_v17 = vmul.f32 1.442695, %v2023_v14 }
 0x3a3   : > { %v2805_v9 = vpop.eup %2804 }
 0x3a4   : > { %v1656_v10 = vsel %vm826_vm2, %v2805_v9, 0.0 }
 0x3ff   : > { %v991_v61 = vpop.f32.mrb[4].mxu1 }
 0x400   : > { %v995_v62 = vadd.f32 %v991_v61, %v916_v60  ;;  %v2605_v63 = vpop.f32.mrb[5].mxu1  ;;  %v2128_v61 = vld [vmem:[#allocation11 + $0x18] sm:$0xff] }
 0x403   : > { %v1266_v2 = vpop.f32.mrb[6].mxu1 }
 0x404   : > { %v1270_v3 = vsel %vm904_vm3, %v1266_v2, -1e+30  ;;  %v2610_v4 = vpop.f32.mrb[7].mxu1 }
 0x405   : > { %v1271_v5 = vsel %vm826_vm2, %v1270_v3, -inf }
 0x406   : > { %1272 = vmax.xlane.f32.xlu1 %v1271_v5 }
 0x417   : > { %1662 = vrot.lane.b32.xlu1 %v3504_v28, %s3162_s14 }
 0x41b   : > { %2036 = vrot.lane.b32.xlu1 %v3504_v28, %s3163_s15 }
 0x43f   : > { %1657 = vadd.xlane.f32.xlu1 %v1656_v10 }
 0x493   : > { %v1273_v13 = vpop.xlane.xlu1 %1272 }
 0x494   : > { %v1274_v15 = vmax.f32 %v1273_v13, -1e+30 }
 0x496   : > { %v1275_v16 = vsub.f32 %v1270_v3, %v1274_v15  ;;  %v1278_v31 = vsub.f32 -1e+30, %v1274_v15 }
 0x497   : > { %v1663_v19 = vpop.permute.xlu1 %1662 }
 0x498   : > { %v1276_v18 = vmul.f32 1.442695, %v1275_v16  ;;  %v1279_v35 = vmul.f32 1.442695, %v1278_v31 }
 0x49a   : > { %2806 = vpow2.f32 %v1276_v18 }
 0x49b   : > { %2808 = vpow2.f32 %v2024_v17  ;;  %v2037_v23 = vpop.permute.xlu1 %2036 }
 0x4a4   : > { %v2807_v20 = vpop.eup %2806 }
 0x4a5   : > { %2614 = vmatmul.mubr.msk.f32.vlgmr.msra.gmra.mrb[8].mxu1 %vm826_vm2, %v2807_v20  ;;  %v1282_v21 = vsel %vm826_vm2, %v2807_v20, 0.0  ;;  %v2809_v22 = vpop.eup %2808 }
 0x4a6   : > { %2622 = vmatpush3.msra.mxu1 %v1663_v19  ;;  %1283 = vadd.xlane.f32.xlu0 %v1282_v21  ;;  %v2030_v24 = vsel %vm826_vm2, %v2809_v22, 0.0 }
 0x4a7   : > { %2623 = vmatprep.mubr.msk.f32.mxu1 %vm3159_vm0, %v3160_v1  ;;  %2631 = vmatprep.subr.mxu1 %v3160_v1 }
 0x4a9   : > { %2624 = vmatmul.mubr.msk.f32.vlgmr.msra.gmra.mrb[10].mxu1 %vm826_vm2, %v2805_v9 }
 0x4aa   : > { %2632 = vmatpush3.msra.mxu1 %v2037_v23  ;;  %2031 = vadd.xlane.f32.xlu0 %v2030_v24 }
 0x4ab   : > { %2633 = vmatprep.mubr.msk.f32.mxu1 %vm3159_vm0, %v3160_v1  ;;  %v2026_v1 = vsub.f32 -1e+30, %v2022_v12 }
 0x4ad   : > { %2634 = vmatmul.mubr.msk.f32.vlgmr.msra.gmra.mrb[12].mxu1 %vm826_vm2, %v2809_v22  ;;  %v2027_v39 = vmul.f32 1.442695, %v2026_v1 }
 0x4ae   : > { %918 = vadd.xlane.f32.xlu0 %v917_v25 }
 0x4cc   : > { %v1658_v44 = vpop.xlane.xlu1 %1657 }
 0x533   : > { %v1284_v26 = vpop.xlane.xlu0 %1283 }
 0x537   : > { %v2032_v27 = vpop.xlane.xlu0 %2031 }
 0x53b   : > { %v919_v28 = vpop.xlane.xlu0 %918 }
 0x53c   : > { %v920_v29 = vadd.f32 %v919_v28, %v916_v60  ;;  %v2127_v60 = vld [vmem:[#allocation11 + $0x10] sm:$0xff] }
 0x53d   : > { %v2669_v5 = vpack.c.bf16 %v2128_v61, %v2127_v60 }
 0x53e   : > { %2810 = vrcp.f32 %v920_v29 }
 0x53f   : > { %2812 = vpow2.f32 %v1279_v35  ;;  %2670 = vmatpush3.bf16.msra.mxu0 %v2669_v5 }
 0x540   : > { %2814 = vpow2.f32 %v1653_v38 }
 0x541   : > { %2816 = vpow2.f32 %v2027_v39 }
 0x548   : > { %v2811_v30 = vpop.eup %2810 }
 0x549   : > { %v997_v32 = vmul.f32 %v2811_v30, %v920_v29  ;;  %v2813_v40 = vpop.eup %2812 }
 0x54a   : > { %v1281_v41 = vmul.f32 0.0, %v2813_v40  ;;  %v2815_v42 = vpop.eup %2814 }
 0x54b   : > { %v998_v33 = vsub.f32 2.0, %v997_v32  ;;  %v1655_v45 = vmul.f32 0.0, %v2815_v42  ;;  %v2817_v46 = vpop.eup %2816 }
 0x54c   : > { %v1285_v43 = vadd.f32 %v1284_v26, %v1281_v41  ;;  %v2029_v48 = vmul.f32 0.0, %v2817_v46 }
 0x54d   : > { %v999_v36 = vmul.f32 %v2811_v30, %v998_v33  ;;  %v1659_v47 = vadd.f32 %v1658_v44, %v1655_v45 }
 0x54e   : > { %2818 = vrcp.f32 %v1285_v43  ;;  %v2033_v49 = vadd.f32 %v2032_v27, %v2029_v48 }
 0x54f   : > { %v1000_v37 = vmul.f32 %v999_v36, %v995_v62  ;;  %2820 = vrcp.f32 %v1659_v47 }
 0x550   : > { %2822 = vrcp.f32 %v2033_v49 }
 0x551   : > { %1001 = vst.msk [vmem:[#allocation2] sm:$0xff] %vm826_vm2, %v1000_v37 }
 0x558   : > { %v2819_v50 = vpop.eup %2818 }
 0x559   : > { %v1366_v51 = vmul.f32 %v2819_v50, %v1285_v43  ;;  %v2821_v52 = vpop.eup %2820 }
 0x55a   : > { %v1740_v53 = vmul.f32 %v2821_v52, %v1659_v47  ;;  %v2823_v55 = vpop.eup %2822 }
 0x55b   : > { %v1367_v54 = vsub.f32 2.0, %v1366_v51  ;;  %v2114_v63 = vmul.f32 %v2823_v55, %v2033_v49 }
 0x55c   : > { %v1741_v62 = vsub.f32 2.0, %v1740_v53 }
 0x55d   : > { %v1368_v3 = vmul.f32 %v2819_v50, %v1367_v54  ;;  %v2115_v8 = vsub.f32 2.0, %v2114_v63 }
 0x55e   : > { %v1742_v10 = vmul.f32 %v2821_v52, %v1741_v62 }
 0x55f   : > { %v2116_v15 = vmul.f32 %v2823_v55, %v2115_v8 }
 0x578   : > { %v1360_v58 = vpop.f32.mrb[8].mxu1 }
 0x579   : > { %v1364_v2 = vadd.f32 %v1360_v58, %v1281_v41  ;;  %v2615_v4 = vpop.f32.mrb[9].mxu1 }
 0x57b   : > { %v1369_v6 = vmul.f32 %v1368_v3, %v1364_v2 }
 0x57c   : > { %v1734_v7 = vpop.f32.mrb[10].mxu1 }
 0x57d   : > { %v1738_v9 = vadd.f32 %v1734_v7, %v1655_v45  ;;  %1371 = vrot.lane.b32.xlu1 %v1369_v6, %s3164_s18  ;;  %v2625_v11 = vpop.f32.mrb[11].mxu1 }
 0x57f   : > { %v1743_v12 = vmul.f32 %v1742_v10, %v1738_v9 }
 0x580   : > { %v2108_v13 = vpop.f32.mrb[12].mxu1 }
 0x581   : > { %v2112_v14 = vadd.f32 %v2108_v13, %v2029_v48  ;;  %v2635_v16 = vpop.f32.mrb[13].mxu1  ;;  %1745 = vrot.lane.b32.xlu0 %v1743_v12, %s3165_s24 }
 0x583   : > { %v2117_v17 = vmul.f32 %v2116_v15, %v2112_v14 }
 0x585   : > { %2119 = vrot.lane.b32.xlu1 %v2117_v17, %s3166_s25 }
 0x5ef   : > { %v1372_v0 = vpop.permute.xlu1 %1371 }
 0x5f0   : > { %1375 = vst.msk [vmem:[#allocation2] sm:$0xff] %vm1374_vm4, %v1372_v0 }
 0x5f3   : > { %v1746_v18 = vpop.permute.xlu0 %1745 }
 0x5f4   : > { %1749 = vst.msk [vmem:[#allocation2] sm:$0xff] %vm1748_vm5, %v1746_v18 }
 0x5f7   : > { %v2120_v19 = vpop.permute.xlu1 %2119 }
 0x5f8   : > { %2123 = vst.msk [vmem:[#allocation2] sm:$0xff] %vm2122_vm6, %v2120_v19 }
 0x5ff   : > { %v2124_v20 = vld [vmem:[#allocation2] sm:$0xff] }
 0x600   : > { %2645 = vmatmul.mubr.msk.f32.vlgmr.msra.gmra.mrb[8].mxu0 %vm404_vm1, %v2124_v20 }
 0x601   : > { %3007 = shalt.err (!%p3004_p6)
}
 0x602   : > { %s3008_s19 = scalar_lea.hbm %s2236_s26, 128  ;;  %s3012_s22 = scalar_lea.hbm %s3656_s7, 256 }
 0x603   : > { %p3009_p11 = scmp.ne.s32.totalorder %s2236_s26, %s3008_s19  ;;  %p3013_p1 = scmp.lt.u32.totalorder %s2236_s26, %s3656_s7 }
 0x604   : > { %p3014_p5 = scmp.lt.u32.totalorder %s3012_s22, %s3008_s19  ;;  %p3016_p9 = scmp.lt.u32.totalorder %s3008_s19, %s2236_s26 }
 0x605   : > { %p3010_p13 = pnand %p3009_p11, %p3705_p7 }
 0x606   : > { %p3015_p3 = por %p3014_p5, %p3013_p1 }
 0x607   : > { %p3011_p8 = pneg %p3010_p13 }
 0x608   : > { %p3017_p0 = por %p3016_p9, %p3015_p3 }
 0x60a   : > { %p3018_p2 = pnand %p3017_p0, %p3011_p8 }
 0x60c   : > { %3021 = shalt.err (!%p3018_p2)
}
 0x60d   : > { %2694 = dma.vmem_to_hbm [thread:$0]  (%p3705_p7), %s2239_s13, 128, %s2236_s26, [#allocation16]  }
 0x60e   : > { %s2249_s14 = scalar_lea.hbm %s3657_s8, %s3355_s11  ;;  %s3168_s15 = smov [#allocation17]  }
 0x60f   : > { %s2251_s18 = sshll.u32 %s3168_s15, 4  ;;  %s2252_s18 = int_to_ptr.vmem [resolvable:$true] %s2251_s18 }
 0x610   : > { %s3022_s24 = scalar_lea.vmem %s2252_s18, 128  ;;  %p3029_p6 = scmp.lt.s32.totalorder %s2252_s18, %s2252_s18 }
 0x611   : > { %p3023_p4 = scmp.ne.s32.totalorder %s2252_s18, %s3022_s24  ;;  %p3030_p11 = scmp.lt.s32.totalorder %s3022_s24, %s3022_s24 }
 0x613   : > { %p3024_p10 = pnand %p3023_p4, %p3705_p7  ;;  %p3031_p13 = por %p3030_p11, %p3029_p6 }
 0x615   : > { %p3025_p12 = pneg %p3024_p10 }
 0x617   : > { %p3032_p8 = pnand %p3031_p13, %p3025_p12 }
 0x619   : > { %3035 = shalt.err (!%p3032_p8)
}
 0x61a   : > { %s3036_s25 = scalar_lea.hbm %s2249_s14, 128  ;;  %s3040_s26 = scalar_lea.hbm %s3657_s8, 256 }
 0x61b   : > { %p3037_p1 = scmp.ne.s32.totalorder %s2249_s14, %s3036_s25  ;;  %p3041_p9 = scmp.lt.u32.totalorder %s2249_s14, %s3657_s8 }
 0x61c   : > { %p3042_p0 = scmp.lt.u32.totalorder %s3040_s26, %s3036_s25  ;;  %p3044_p4 = scmp.lt.u32.totalorder %s3036_s25, %s2249_s14 }
 0x61d   : > { %p3038_p5 = pnand %p3037_p1, %p3705_p7 }
 0x61e   : > { %p3043_p2 = por %p3042_p0, %p3041_p9 }
 0x61f   : > { %p3039_p3 = pneg %p3038_p5 }
 0x620   : > { %p3045_p10 = por %p3044_p4, %p3043_p2 }
 0x622   : > { %p3046_p12 = pnand %p3045_p10, %p3039_p3 }
 0x624   : > { %3049 = shalt.err (!%p3046_p12)
}
 0x625   : > { %2695 = dma.vmem_to_hbm [thread:$0]  (%p3705_p7), %s2252_s18, 128, %s2249_s14, [#allocation16]   ;;  %v2519_v21 = vld [vmem:[#allocation12] ss:$0 sm:$0xff] }
 0x626   : > { %s388_s30 = sand.u32 1, %s3132_s28   ;;  %s3706_s21 = sld [smem:[#allocation30_spill]] }
 0x627   : > { %s2487_s19 = sshll.u32 %s388_s30, 3  ;;  %s2211_s2 = scalar_lea.sflag [#allocation5], %s388_s30 }
 0x628   : > { %s390_s23 = scalar_lea.vmem [#allocation14], %s2487_s19  ;;  %s3169_s15 = smov [#allocation14]  }
 0x629   : > { %s2225_s20 = sshll.u32 %s390_s23, 4  ;;  %s3054_s18 = sshll.u32 %s3169_s15, 4  ;;  %s3599_s20 = int_to_ptr.vmem [resolvable:$true] %s2225_s20  ;;  %s3055_s18 = int_to_ptr.vmem [resolvable:$false] %s3054_s18 }
 0x62a   : > { %s3050_s14 = scalar_lea.vmem %s3599_s20, 128  ;;  %s3056_s24 = scalar_lea.vmem %s3055_s18, 256 }
 0x62b   : > { %p3051_p6 = scmp.ne.s32.totalorder %s3599_s20, %s3050_s14  ;;  %p3057_p8 = scmp.lt.s32.totalorder %s3599_s20, %s3055_s18 }
 0x62c   : > { %s3597_s3 = scalar_lea.hbm %s3706_s21, %s3355_s11  ;;  %p3058_p1 = scmp.lt.s32.totalorder %s3056_s24, %s3050_s14 }
 0x62d   : > { %p3052_p11 = pnand %p3051_p6, %p3705_p7 }
 0x62e   : > { %p3059_p5 = por %p3058_p1, %p3057_p8 }
 0x62f   : > { %p3053_p13 = pneg %p3052_p11 }
 0x631   : > { %p3060_p3 = pnand %p3059_p5, %p3053_p13 }
 0x6d3   : > { %v2205_v22 = vpop.f32.mrb[8].mxu0 }
 0x6d4   : > { %v2206_v23 = vadd.f32 %v2519_v21, %v2205_v22  ;;  %v2646_v24 = vpop.f32.mrb[9].mxu0 }
 0x6d6   : > { %2209 = vst.msk [vmem:[%s390_s23] sm:$0xff] %vm404_vm1, %v2206_v23 }
 0x6d7   : > { %3063 = shalt.err (!%p3060_p3)
}
 0x6d8   : > { %s3064_s11 = scalar_lea.hbm %s3597_s3, 128  ;;  %s3068_s1 = scalar_lea.hbm %s3706_s21, 256 }
 0x6d9   : > { %p3065_p9 = scmp.ne.s32.totalorder %s3597_s3, %s3064_s11  ;;  %p3069_p4 = scmp.lt.u32.totalorder %s3597_s3, %s3706_s21 }
 0x6da   : > { %p3070_p10 = scmp.lt.u32.totalorder %s3068_s1, %s3064_s11  ;;  %p3072_p6 = scmp.lt.u32.totalorder %s3064_s11, %s3597_s3 }
 0x6db   : > { %p3066_p0 = pnand %p3065_p9, %p3705_p7 }
 0x6dc   : > { %p3071_p12 = por %p3070_p10, %p3069_p4 }
 0x6dd   : > { %p3067_p2 = pneg %p3066_p0 }
 0x6de   : > { %p3073_p11 = por %p3072_p6, %p3071_p12 }
 0x6e0   : > { %p3074_p13 = pnand %p3073_p11, %p3067_p2 }
 0x6e2   : > { %3077 = shalt.err (!%p3074_p13)
}
 0x6e3   : > { %2693 = dma.vmem_to_hbm [thread:$0]  (%p3705_p7), %s3599_s20, 128, %s3597_s3, %s2211_s2  }
 0x6e4   : > { %3119 = dma.done.wait (%p3705_p7), [#allocation16], 256  }
 0x6e5   : > { %3121 = vsyncadd (%p3705_p7), [#allocation16], 4294967040 }
 0x6e6 PF: > { %p2732_p8 = scmp.ge.s32.totalorder %s3148_s10, 2  ;;  %s2271_s13 = sand.u32 1, %s3128_s27  }
 0x6e7   : > { %p3707_p1 = scmp.ne.s32.totalorder %s3693_s12, 0  ;;  %s2272_s30 = scalar_lea.sflag [#allocation5], %s2271_s13 }
 0x6e9   : > { %p2719_p5 = pnand %p2732_p8, %p3707_p1 }
 0x6eb   : > { %3123 = dma.done.wait (!%p2719_p5), %s2272_s30, 128  }
 0x6ec   : > { %3125 = vsyncadd (!%p2719_p5), %s2272_s30, 4294967168  ;;  %s27_s10 = sadd.s32 1, %s3148_s10   ;;  %s3708_s30 = sld [smem:[#allocation24_spill]] }
 0x6ed   : > { %p24_p3 = scmp.ge.s32.totalorder %s27_s10, 4   ;;  %s3709_s9 = sld [smem:[#allocation25_spill]] }
 0x6ee   : > { %s3710_s27 = smov %s3132_s28  ;;  %s3711_s28 = smov %s3136_s29 }
 0x6ef   : > { %s3712_s29 = smov %s3366_s16  ;;  %26 = sbr.rel (!%p24_p3) target bundleno = 15 (0xf), region = 207 }
 0x6f6   :  { %2277 = vsyncpa [#allocation4], 1 }
 0x6f7   :  { %2279 = vsyncpa [#allocation4 + $0x1], 1 }
 0x6f8   :  { %2280 = vsyncpa [#allocation7], 1 }
 0x6f9   :  { %2281 = vsyncpa [#allocation10], 1 }
 0x6fa   :  { %2282 = vsyncpa [#allocation13], 1 }
 0x6fb   :  { %2283 = vsyncpa [#allocation5], 1 }
 0x6fc   :  { %2285 = vsyncpa [#allocation5 + $0x1], 1 }
 0x6fd   :  { %2286 = vsyncpa [#allocation16], 1 }

</bundles_post_ra>
